<compile_context>
chip_gen: v7x
topology: tpu7x:2x2x1
jax: 0.10.0
libtpu: 0.0.40
codegen_flags: <defaults>
</compile_context>

<pallas_src>
import functools

import jax
import jax.numpy as jnp
from jax import lax
from jax.experimental import pallas as pl
from jax.experimental.pallas import tpu as pltpu


def _round_up(a, m):
    return -(-a // m) * m


def _fuse_kernel(rec_ref, off_ref, coef_ref, pq_ref, feat_ref, out_ref, *,
                 H, W, TP, T):
    # grid = (batch b [parallel], ego i, neighbor j [max reduction, innermost])
    del off_ref
    b = pl.program_id(0)
    i = pl.program_id(1)
    j = pl.program_id(2)
    n = rec_ref[b]
    valid = jnp.logical_and(i < n, j < n)
    C = out_ref.shape[1]

    @pl.when(valid)
    def _compute():
        # Normalized 2x3 affine coefficients for pair (ego i <- neighbor j),
        # F.affine_grid convention: row 0 -> source x (col), row 1 -> source y.
        cf = coef_ref[0]                                   # (2, 128) f32
        a00 = cf[0:1, 0:1]
        a01 = cf[0:1, 1:2]
        a02 = cf[0:1, 2:3]
        a10 = cf[1:2, 0:1]
        a11 = cf[1:2, 1:2]
        a12 = cf[1:2, 2:3]
        feat = feat_ref[0]                                 # (C*H, W) bf16

        def tile_body(t, carry):
            start = pl.multiple_of(t * TP, TP)
            xn = pq_ref[0:1, pl.ds(start, TP)]             # (1, TP) out col, norm.
            yn = pq_ref[1:2, pl.ds(start, TP)]             # (1, TP) out row, norm.
            gx = a00 * xn + a01 * yn + a02
            gy = a10 * xn + a11 * yn + a12
            sx = ((gx + 1.0) * W - 1.0) * 0.5              # source col (align_corners=False)
            sy = ((gy + 1.0) * H - 1.0) * 0.5              # source row
            qw = lax.broadcasted_iota(jnp.int32, (W, TP), 0).astype(jnp.float32)
            qh = lax.broadcasted_iota(jnp.int32, (H, TP), 0).astype(jnp.float32)
            # Separable bilinear taps; out-of-image taps get zero weight, which
            # reproduces grid_sample(padding_mode='zeros').
            wx = jnp.maximum(0.0, 1.0 - jnp.abs(sx - qw)).astype(jnp.bfloat16)  # (W, TP)
            wy = jnp.maximum(0.0, 1.0 - jnp.abs(sy - qh))                       # (H, TP) f32
            # Stage 1 (MXU): contract over source columns.  M = C*H fills the
            # MXU even for small C; N = TP is lane-dense.
            tmp = jnp.dot(feat, wx, preferred_element_type=jnp.float32)         # (C*H, TP)
            # Stage 2 (VPU + sublane reduce): weight source rows, reduce over H.
            cand = jnp.sum(tmp.reshape(C, H, TP) * wy[None, :, :], axis=1)      # (C, TP)
            # MaxFusion over neighbors j; output block is resident across j.
            prev = jnp.where(j == 0,
                             jnp.full_like(cand, -jnp.inf),
                             out_ref[0, :, pl.ds(start, TP)])
            out_ref[0, :, pl.ds(start, TP)] = jnp.maximum(prev, cand)
            return carry

        lax.fori_loop(0, T, tile_body, 0, unroll=(T <= 2))


def _plan_tiling(C, H, W, max_p_tile=512):
    """Pick (HW_pad, TP, T) and the VMEM limit from the device's capacity."""
    try:
        cap = int(pltpu.get_tpu_info().vmem_capacity_bytes)
    except Exception:
        cap = 64 * 2 ** 20
    budget = int(0.75 * cap)
    HW = H * W
    tile = max(128, max_p_tile - max_p_tile % 128)
    while True:
        if _round_up(HW, 128) <= tile:
            HW_pad = _round_up(HW, 128)
            TP = HW_pad
        else:
            HW_pad = _round_up(HW, tile)
            TP = tile
        T = HW_pad // TP
        est = (4 * C * H * _round_up(W, 128) * 2     # bf16 feature block, double-buffered
               + 2 * C * HW_pad * 4                  # resident f32 output block
               + 2 * 2 * HW_pad * 4                  # pq coordinate table
               + 3 * C * H * TP * 4                  # stage-1 result + stage-2 temps
               + 3 * _round_up(W, 8) * TP * 4        # wx build temporaries
               + 2 * _round_up(H, 8) * TP * 4        # wy
               + (2 << 20))                          # slack / small blocks
        if est <= budget or tile <= 128:
            break
        tile -= 128
    vmem_limit = int(0.85 * cap)                     # per-generation headroom
    return HW_pad, TP, T, vmem_limit


def _fuse_all(rec, off, coef, pq, feat, *, total, B, L, C, H, W, HW_pad, TP, T,
              vmem_limit):
    kern = functools.partial(_fuse_kernel, H=H, W=W, TP=TP, T=T)

    def coef_map(b, i, j, rec_ref, off_ref):
        return (b * L * L + i * L + j, 0, 0)

    def pq_map(b, i, j, rec_ref, off_ref):
        return (0, 0)

    def feat_map(b, i, j, rec_ref, off_ref):
        # Clamp so padded (i, j) pairs repeat the previous block index (their
        # DMA is skipped) and never index out of range.
        rmax = jnp.maximum(rec_ref[b] - 1, 0)
        jj = jnp.where(i < rec_ref[b], jnp.minimum(j, rmax), rmax)
        return (jnp.minimum(off_ref[b] + jj, total - 1), 0, 0)

    def out_map(b, i, j, rec_ref, off_ref):
        # Constant across j (resident accumulator).  Padded egos alias the
        # batch's last valid row; the kernel never writes there (valid=False).
        rmax = jnp.maximum(rec_ref[b] - 1, 0)
        ii = jnp.minimum(i, rmax)
        return (jnp.minimum(off_ref[b] + ii, total - 1), 0, 0)

    return pl.pallas_call(
        kern,
        out_shape=jax.ShapeDtypeStruct((total, C, HW_pad), jnp.float32),
        grid_spec=pltpu.PrefetchScalarGridSpec(
            num_scalar_prefetch=2,                    # record_len, row offsets (SMEM)
            grid=(B, L, L),
            in_specs=[
                pl.BlockSpec((1, 2, 128), coef_map),     # normalized affine coeffs
                pl.BlockSpec((2, HW_pad), pq_map),       # output-pixel normalized coords
                pl.BlockSpec((1, C * H, W), feat_map),   # bf16 features, (C*H, W) layout
            ],
            out_specs=pl.BlockSpec((1, C, HW_pad), out_map),
        ),
        compiler_params=pltpu.CompilerParams(
            # Only the batch axis is parallel: padded-ego output aliasing is
            # only race-free if the i/j axes stay on one core.
            dimension_semantics=("parallel", "arbitrary", "arbitrary"),
            vmem_limit_bytes=vmem_limit),
    )(rec, off, coef, pq, feat)


def _normalize_pairwise_tfm(pairwise_t_matrix, H, W, discrete_ratio,
                            downsample_rate):
    # Mirrors the in-place preprocessing in Where2comm.forward.
    tm = pairwise_t_matrix[:, :, :, (0, 1), :][:, :, :, :, (0, 1, 3)]  # (B,L,L,2,3)
    tm = tm.at[..., 0, 1].multiply(H / W)
    tm = tm.at[..., 1, 0].multiply(W / H)
    tm = tm.at[..., 0, 2].set(tm[..., 0, 2] / (downsample_rate * discrete_ratio * W) * 2)
    tm = tm.at[..., 1, 2].set(tm[..., 1, 2] / (downsample_rate * discrete_ratio * H) * 2)
    return tm


def _output_norm_coords(H, W, HW_pad):
    # Normalized output-pixel coordinates (align_corners=False):
    #   pq[0, p] = x_n(col(p)), pq[1, p] = y_n(row(p)); padded pixels are 0.
    p = jnp.arange(HW_pad)
    in_img = p < H * W
    xn = (2.0 * (p % W).astype(jnp.float32) + 1.0) / W - 1.0
    yn = (2.0 * (p // W).astype(jnp.float32) + 1.0) / H - 1.0
    return jnp.stack([jnp.where(in_img, xn, 0.0), jnp.where(in_img, yn, 0.0)])


def where2comm_forward(x, confidence_map, record_len, pairwise_t_matrix,
                       voxel_size=(0.4, 0.4, 4.0), downsample_rate=2,
                       max_p_tile=512):
    """x: (sum(n_cav), C, H, W) float32 (PyTorch NCHW convention)."""
    del confidence_map  # only regrouped (and unused) when communication=False
    total, C, H, W = x.shape
    B, L = pairwise_t_matrix.shape[:2]
    HW = H * W
    discrete_ratio = float(voxel_size[0])

    tm = _normalize_pairwise_tfm(jnp.asarray(pairwise_t_matrix, jnp.float32),
                                 H, W, discrete_ratio, downsample_rate)
    coef = jnp.zeros((B * L * L, 2, 128), jnp.float32)
    coef = coef.at[:, :, :3].set(tm.reshape(B * L * L, 2, 3))

    rec = jnp.asarray(record_len, jnp.int32)                          # (B,)
    off = jnp.concatenate([jnp.zeros((1,), jnp.int32),
                           jnp.cumsum(rec)[:-1].astype(jnp.int32)])   # (B,)

    HW_pad, TP, T, vmem_limit = _plan_tiling(C, H, W, max_p_tile)
    pq = _output_norm_coords(H, W, HW_pad)
    # NCHW -> (rows, C*H, W) in bf16: free reshape, halves feature HBM traffic.
    feat = jnp.asarray(x, jnp.float32).reshape(total, C * H, W).astype(jnp.bfloat16)

    out = _fuse_all(rec, off, coef, pq, feat, total=total, B=B, L=L, C=C, H=H,
                    W=W, HW_pad=HW_pad, TP=TP, T=T, vmem_limit=vmem_limit)
    x_fuse = out[:, :, :HW].reshape(total, C, H, W)
    communication_rates = jnp.array(0, dtype=jnp.int32)
    parameter_dict = {}
    return x_fuse, communication_rates, parameter_dict


# --------------------------- pure-JAX reference ---------------------------

def _affine_src_coords(tm, H, W):
    # tm: (B, L, L, 2, 3) normalized affine (F.affine_grid convention).
    # returns (B*L*L, 2, H*W) un-normalized source pixel coords: [.., 0, :] = x
    # (column) and [.., 1, :] = y (row), align_corners=False.
    xs = (2.0 * jnp.arange(W, dtype=jnp.float32) + 1.0) / W - 1.0
    ys = (2.0 * jnp.arange(H, dtype=jnp.float32) + 1.0) / H - 1.0
    xb = xs[None, :]
    yb = ys[:, None]

    def coef(r, c):
        return tm[..., r, c][..., None, None]

    gx = coef(0, 0) * xb + coef(0, 1) * yb + coef(0, 2)
    gy = coef(1, 0) * xb + coef(1, 1) * yb + coef(1, 2)
    ix = ((gx + 1.0) * W - 1.0) * 0.5
    iy = ((gy + 1.0) * H - 1.0) * 0.5
    coords = jnp.stack([ix, iy], axis=3)
    B, L = tm.shape[0], tm.shape[1]
    return coords.reshape(B * L * L, 2, H * W)


def _reference_forward(x, record_len, pairwise_t_matrix,
                       voxel_size=(0.4, 0.4, 4.0), downsample_rate=2):
    """Dense f32 reference of warp_affine_simple + MaxFusion (for testing)."""
    total, C, H, W = x.shape
    B, L = pairwise_t_matrix.shape[:2]
    HW = H * W
    tm = _normalize_pairwise_tfm(jnp.asarray(pairwise_t_matrix, jnp.float32),
                                 H, W, float(voxel_size[0]), downsample_rate)
    coords = _affine_src_coords(tm, H, W).reshape(B, L, L, 2, HW)
    qidx = jnp.arange(HW)
    qh = (qidx // W).astype(jnp.float32)
    qw = (qidx % W).astype(jnp.float32)
    x_flat = jnp.asarray(x, jnp.float32).reshape(total, C, HW)

    rec = [int(n) for n in record_len]
    outs, offp = [], 0
    for b in range(B):
        n = rec[b]
        feats = x_flat[offp:offp + n]
        for i in range(n):
            sx = coords[b, i, :n, 0, :]
            sy = coords[b, i, :n, 1, :]
            wy = jnp.maximum(0.0, 1.0 - jnp.abs(sy[:, :, None] - qh[None, None, :]))
            wx = jnp.maximum(0.0, 1.0 - jnp.abs(sx[:, :, None] - qw[None, None, :]))
            wmat = wy * wx
            warped = jnp.einsum('jpq,jcq->jcp', wmat, feats)
            outs.append(jnp.max(warped, axis=0))
        offp += n
    return jnp.stack(outs).reshape(total, C, H, W)


if __name__ == "__main__":
    key = jax.random.PRNGKey(0)
    B, L, C, H, W = 2, 3, 32, 16, 16
    record_len = [2, 2]
    total = sum(record_len)

    k1, k2, k3, k4, k5 = jax.random.split(key, 5)
    x = jax.random.normal(k1, (total, C, H, W), dtype=jnp.float32)
    confidence_map = jax.random.uniform(k2, (total, 1, H, W), dtype=jnp.float32)

    # Pairwise transforms: small rotation + translation off-diagonal, identity
    # on the diagonal (as produced by OpenCOOD's get_pairwise_transformation).
    theta = jax.random.uniform(k3, (B, L, L), minval=-0.2, maxval=0.2)
    tx = jax.random.uniform(k4, (B, L, L), minval=-2.0, maxval=2.0)
    ty = jax.random.uniform(k5, (B, L, L), minval=-2.0, maxval=2.0)
    eye = jnp.eye(L, dtype=bool)[None, :, :]
    theta = jnp.where(eye, 0.0, theta)
    tx = jnp.where(eye, 0.0, tx)
    ty = jnp.where(eye, 0.0, ty)
    pairwise = jnp.broadcast_to(jnp.eye(4, dtype=jnp.float32), (B, L, L, 4, 4))
    c, s = jnp.cos(theta), jnp.sin(theta)
    pairwise = pairwise.at[..., 0, 0].set(c)
    pairwise = pairwise.at[..., 0, 1].set(-s)
    pairwise = pairwise.at[..., 1, 0].set(s)
    pairwise = pairwise.at[..., 1, 1].set(c)
    pairwise = pairwise.at[..., 0, 3].set(tx)
    pairwise = pairwise.at[..., 1, 3].set(ty)

    x_fuse, comm_rate, pdict = where2comm_forward(
        x, confidence_map, record_len, pairwise)
    x_fuse = jax.block_until_ready(x_fuse)
    assert x_fuse.shape == (total, C, H, W)

    # Check against a dense f32 pure-JAX reference (tolerance covers bf16 taps).
    ref = jax.block_until_ready(_reference_forward(x, record_len, pairwise))
    err = float(jnp.max(jnp.abs(x_fuse - ref)))
    assert err < 5e-2, f"mismatch vs f32 reference: max abs err = {err}"

    # Identity transforms => fused output == per-batch max over agents.
    ident = jnp.broadcast_to(jnp.eye(4, dtype=jnp.float32), (B, L, L, 4, 4))
    x_id, _, _ = where2comm_forward(x, confidence_map, record_len, ident)
    x_id = jax.block_until_ready(x_id)
    ref_id, offp = [], 0
    for n in record_len:
        m = jnp.max(x[offp:offp + n], axis=0)
        ref_id.extend([m] * n)
        offp += n
    ref_id = jnp.stack(ref_id)
    err_id = float(jnp.max(jnp.abs(x_id - ref_id)))
    assert err_id < 5e-2, f"identity-warp max-fusion check failed: {err_id}"

    print("KERNEL_OK")
</pallas_src>

<mosaic_0001>
module attributes {stable_mosaic.version = 11 : i64} {
  func.func @_fuse_kernel(%arg0: i32, %arg1: i32, %arg2: i32, %arg3: memref<2xi32, #tpu.memory_space<smem>>, %arg4: memref<2xi32, #tpu.memory_space<smem>>, %arg5: memref<1x2x128xf32, #tpu.memory_space<vmem>>, %arg6: memref<2x256xf32, #tpu.memory_space<vmem>>, %arg7: memref<1x512x16xbf16, #tpu.memory_space<vmem>>, %arg8: memref<1x32x256xf32, #tpu.memory_space<vmem>>) attributes {dimension_semantics = [#tpu.dimension_semantics<parallel>, #tpu.dimension_semantics<arbitrary>, #tpu.dimension_semantics<arbitrary>], iteration_bounds = array<i64: 2, 3, 3>, scalar_prefetch = 2 : i64, scratch_operands = 0 : i64, tpu.core_type = #tpu.core_type<tc>, window_params = [{transform_indices = @transform_0, window_bounds = array<i64: 1, 2, 128>}, {pipeline_mode = #tpu.pipeline_mode<synchronous>, transform_indices = @transform_1, window_bounds = array<i64: 2, 256>}, {transform_indices = @transform_2, window_bounds = array<i64: 1, 512, 16>}, {transform_indices = @transform_3, window_bounds = array<i64: 1, 32, 256>}]} {
    %0 = arith.index_cast %arg0 : i32 to index
    %1 = memref.load %arg3[%0] : memref<2xi32, #tpu.memory_space<smem>>
    %2 = arith.cmpi slt, %arg1, %1 : i32
    %3 = arith.cmpi slt, %arg2, %1 : i32
    %4 = arith.andi %2, %3 : i1
    %5 = arith.extui %4 : i1 to i32
    %c0_i32 = arith.constant 0 : i32
    %6 = arith.cmpi ne, %5, %c0_i32 : i32
    scf.if %6 {
      %c0 = arith.constant 0 : index
      %c0_0 = arith.constant 0 : index
      %c0_1 = arith.constant 0 : index
      %7 = vector.load %arg5[%c0, %c0_0, %c0_1] : memref<1x2x128xf32, #tpu.memory_space<vmem>>, vector<1x2x128xf32>
      %8 = vector.shape_cast %7 : vector<1x2x128xf32> to vector<2x128xf32>
      %9 = vector.extract_strided_slice %8 {offsets = [0, 0], sizes = [1, 1], strides = [1, 1]} : vector<2x128xf32> to vector<1x1xf32>
      %10 = vector.extract_strided_slice %8 {offsets = [0, 1], sizes = [1, 1], strides = [1, 1]} : vector<2x128xf32> to vector<1x1xf32>
      %11 = vector.extract_strided_slice %8 {offsets = [0, 2], sizes = [1, 1], strides = [1, 1]} : vector<2x128xf32> to vector<1x1xf32>
      %12 = vector.extract_strided_slice %8 {offsets = [1, 0], sizes = [1, 1], strides = [1, 1]} : vector<2x128xf32> to vector<1x1xf32>
      %13 = vector.extract_strided_slice %8 {offsets = [1, 1], sizes = [1, 1], strides = [1, 1]} : vector<2x128xf32> to vector<1x1xf32>
      %14 = vector.extract_strided_slice %8 {offsets = [1, 2], sizes = [1, 1], strides = [1, 1]} : vector<2x128xf32> to vector<1x1xf32>
      %c0_2 = arith.constant 0 : index
      %c0_3 = arith.constant 0 : index
      %c0_4 = arith.constant 0 : index
      %15 = vector.load %arg7[%c0_2, %c0_3, %c0_4] : memref<1x512x16xbf16, #tpu.memory_space<vmem>>, vector<1x512x16xbf16>
      %16 = vector.shape_cast %15 : vector<1x512x16xbf16> to vector<512x16xbf16>
      %c0_i32_5 = arith.constant 0 : i32
      %c256_i32 = arith.constant 256 : i32
      %17 = arith.muli %c0_i32_5, %c256_i32 : i32
      %18 = tpu.assume_multiple %17, 256 : i32
      %c0_6 = arith.constant 0 : index
      %19 = arith.index_cast %18 : i32 to index
      %20 = vector.load %arg6[%c0_6, %19] : memref<2x256xf32, #tpu.memory_space<vmem>>, vector<1x256xf32>
      %c1 = arith.constant 1 : index
      %21 = arith.index_cast %18 : i32 to index
      %22 = vector.load %arg6[%c1, %21] : memref<2x256xf32, #tpu.memory_space<vmem>>, vector<1x256xf32>
      %23 = vector.broadcast %9 : vector<1x1xf32> to vector<1x256xf32>
      %24 = arith.mulf %23, %20 : vector<1x256xf32>
      %25 = vector.broadcast %10 : vector<1x1xf32> to vector<1x256xf32>
      %26 = arith.mulf %25, %22 : vector<1x256xf32>
      %27 = arith.addf %24, %26 : vector<1x256xf32>
      %28 = vector.broadcast %11 : vector<1x1xf32> to vector<1x256xf32>
      %29 = arith.addf %27, %28 : vector<1x256xf32>
      %30 = vector.broadcast %12 : vector<1x1xf32> to vector<1x256xf32>
      %31 = arith.mulf %30, %20 : vector<1x256xf32>
      %32 = vector.broadcast %13 : vector<1x1xf32> to vector<1x256xf32>
      %33 = arith.mulf %32, %22 : vector<1x256xf32>
      %34 = arith.addf %31, %33 : vector<1x256xf32>
      %35 = vector.broadcast %14 : vector<1x1xf32> to vector<1x256xf32>
      %36 = arith.addf %34, %35 : vector<1x256xf32>
      %cst = arith.constant 1.000000e+00 : f32
      %37 = vector.broadcast %cst : f32 to vector<1x256xf32>
      %38 = arith.addf %29, %37 : vector<1x256xf32>
      %cst_7 = arith.constant 1.600000e+01 : f32
      %39 = vector.broadcast %cst_7 : f32 to vector<1x256xf32>
      %40 = arith.mulf %38, %39 : vector<1x256xf32>
      %cst_8 = arith.constant 1.000000e+00 : f32
      %41 = vector.broadcast %cst_8 : f32 to vector<1x256xf32>
      %42 = arith.subf %40, %41 : vector<1x256xf32>
      %cst_9 = arith.constant 5.000000e-01 : f32
      %43 = vector.broadcast %cst_9 : f32 to vector<1x256xf32>
      %44 = arith.mulf %42, %43 : vector<1x256xf32>
      %cst_10 = arith.constant 1.000000e+00 : f32
      %45 = vector.broadcast %cst_10 : f32 to vector<1x256xf32>
      %46 = arith.addf %36, %45 : vector<1x256xf32>
      %cst_11 = arith.constant 1.600000e+01 : f32
      %47 = vector.broadcast %cst_11 : f32 to vector<1x256xf32>
      %48 = arith.mulf %46, %47 : vector<1x256xf32>
      %cst_12 = arith.constant 1.000000e+00 : f32
      %49 = vector.broadcast %cst_12 : f32 to vector<1x256xf32>
      %50 = arith.subf %48, %49 : vector<1x256xf32>
      %cst_13 = arith.constant 5.000000e-01 : f32
      %51 = vector.broadcast %cst_13 : f32 to vector<1x256xf32>
      %52 = arith.mulf %50, %51 : vector<1x256xf32>
      %53 = tpu.iota {dimensions = array<i32: 0>} : vector<16x256xi32>
      %54 = arith.sitofp %53 : vector<16x256xi32> to vector<16x256xf32>
      %55 = tpu.iota {dimensions = array<i32: 0>} : vector<16x256xi32>
      %56 = arith.sitofp %55 : vector<16x256xi32> to vector<16x256xf32>
      %57 = vector.broadcast %44 : vector<1x256xf32> to vector<16x256xf32>
      %58 = arith.subf %57, %54 : vector<16x256xf32>
      %59 = math.absf %58 : vector<16x256xf32>
      %cst_14 = arith.constant 1.000000e+00 : f32
      %60 = vector.broadcast %cst_14 : f32 to vector<16x256xf32>
      %61 = arith.subf %60, %59 : vector<16x256xf32>
      %cst_15 = arith.constant 0.000000e+00 : f32
      %62 = vector.broadcast %cst_15 : f32 to vector<16x256xf32>
      %63 = arith.maximumf %62, %61 : vector<16x256xf32>
      %64 = arith.truncf %63 : vector<16x256xf32> to vector<16x256xbf16>
      %65 = vector.broadcast %52 : vector<1x256xf32> to vector<16x256xf32>
      %66 = arith.subf %65, %56 : vector<16x256xf32>
      %67 = math.absf %66 : vector<16x256xf32>
      %cst_16 = arith.constant 1.000000e+00 : f32
      %68 = vector.broadcast %cst_16 : f32 to vector<16x256xf32>
      %69 = arith.subf %68, %67 : vector<16x256xf32>
      %cst_17 = arith.constant 0.000000e+00 : f32
      %70 = vector.broadcast %cst_17 : f32 to vector<16x256xf32>
      %71 = arith.maximumf %70, %69 : vector<16x256xf32>
      %cst_18 = arith.constant dense<0.000000e+00> : vector<512x256xf32>
      %72 = tpu.matmul %16, %64, %cst_18 {dimension_numbers = #tpu.dot_dimension_numbers<[1], [0], [0], [1], [0, 0, 1, 1], [], []>} : vector<512x16xbf16>, vector<16x256xbf16>, vector<512x256xf32> -> vector<512x256xf32>
      %73 = vector.shape_cast %72 : vector<512x256xf32> to vector<32x16x256xf32>
      %74 = vector.shape_cast %71 : vector<16x256xf32> to vector<1x16x256xf32>
      %75 = vector.broadcast %74 : vector<1x16x256xf32> to vector<32x16x256xf32>
      %76 = arith.mulf %73, %75 : vector<32x16x256xf32>
      %cst_19 = arith.constant dense<0.000000e+00> : vector<32x256xf32>
      %77 = vector.multi_reduction <add>, %76, %cst_19 [1] : vector<32x16x256xf32> to vector<32x256xf32>
      %c0_i32_20 = arith.constant 0 : i32
      %78 = arith.cmpi eq, %arg2, %c0_i32_20 : i32
      %cst_21 = arith.constant 0xFF800000 : f32
      %79 = vector.broadcast %cst_21 : f32 to vector<32x256xf32>
      %c0_22 = arith.constant 0 : index
      %c0_23 = arith.constant 0 : index
      %80 = arith.index_cast %18 : i32 to index
      %81 = vector.load %arg8[%c0_22, %c0_23, %80] : memref<1x32x256xf32, #tpu.memory_space<vmem>>, vector<1x32x256xf32>
      %82 = vector.shape_cast %81 : vector<1x32x256xf32> to vector<32x256xf32>
      %83 = arith.select %78, %79, %82 : vector<32x256xf32>
      %84 = arith.maximumf %83, %77 : vector<32x256xf32>
      %c0_24 = arith.constant 0 : index
      %c0_25 = arith.constant 0 : index
      %85 = arith.index_cast %18 : i32 to index
      %86 = vector.load %arg8[%c0_24, %c0_25, %85] : memref<1x32x256xf32, #tpu.memory_space<vmem>>, vector<1x32x256xf32>
      %87 = vector.shape_cast %86 : vector<1x32x256xf32> to vector<32x256xf32>
      %88 = vector.shape_cast %84 : vector<32x256xf32> to vector<1x32x256xf32>
      tpu.vector_store %arg8[%c0_24, %c0_25, %85], %88 {strides = array<i32>} : memref<1x32x256xf32, #tpu.memory_space<vmem>>, vector<1x32x256xf32>,
      %c1_i32 = arith.constant 1 : i32
    } else {
    }
    return
  }
  func.func @transform_0(%arg0: i32, %arg1: i32, %arg2: i32, %arg3: memref<2xi32, #tpu.memory_space<smem>>, %arg4: memref<2xi32, #tpu.memory_space<smem>>) -> (i32, i32, i32) {
    %c3_i32 = arith.constant 3 : i32
    %0 = arith.muli %arg0, %c3_i32 : i32
    %c3_i32_0 = arith.constant 3 : i32
    %1 = arith.muli %0, %c3_i32_0 : i32
    %c3_i32_1 = arith.constant 3 : i32
    %2 = arith.muli %arg1, %c3_i32_1 : i32
    %3 = arith.addi %1, %2 : i32
    %4 = arith.addi %3, %arg2 : i32
    %c0_i32 = arith.constant 0 : i32
    %c0_i32_2 = arith.constant 0 : i32
    %c0_i32_3 = arith.constant 0 : i32
    return %4, %c0_i32, %c0_i32_2 : i32, i32, i32
  }
  func.func @transform_1(%arg0: i32, %arg1: i32, %arg2: i32, %arg3: memref<2xi32, #tpu.memory_space<smem>>, %arg4: memref<2xi32, #tpu.memory_space<smem>>) -> (i32, i32) {
    %c0_i32 = arith.constant 0 : i32
    %c0_i32_0 = arith.constant 0 : i32
    %c0_i32_1 = arith.constant 0 : i32
    return %c0_i32, %c0_i32_0 : i32, i32
  }
  func.func @transform_2(%arg0: i32, %arg1: i32, %arg2: i32, %arg3: memref<2xi32, #tpu.memory_space<smem>>, %arg4: memref<2xi32, #tpu.memory_space<smem>>) -> (i32, i32, i32) {
    %0 = arith.index_cast %arg0 : i32 to index
    %1 = memref.load %arg3[%0] : memref<2xi32, #tpu.memory_space<smem>>
    %c1_i32 = arith.constant 1 : i32
    %2 = arith.subi %1, %c1_i32 : i32
    %c0_i32 = arith.constant 0 : i32
    %3 = arith.maxsi %2, %c0_i32 : i32
    %4 = arith.index_cast %arg0 : i32 to index
    %5 = memref.load %arg3[%4] : memref<2xi32, #tpu.memory_space<smem>>
    %6 = arith.cmpi slt, %arg1, %5 : i32
    %7 = arith.minsi %arg2, %3 : i32
    %8 = arith.select %6, %7, %3 : i32
    %9 = arith.index_cast %arg0 : i32 to index
    %10 = memref.load %arg4[%9] : memref<2xi32, #tpu.memory_space<smem>>
    %11 = arith.addi %10, %8 : i32
    %c3_i32 = arith.constant 3 : i32
    %12 = arith.minsi %11, %c3_i32 : i32
    %c0_i32_0 = arith.constant 0 : i32
    %c0_i32_1 = arith.constant 0 : i32
    %c0_i32_2 = arith.constant 0 : i32
    return %12, %c0_i32_0, %c0_i32_1 : i32, i32, i32
  }
  func.func @transform_3(%arg0: i32, %arg1: i32, %arg2: i32, %arg3: memref<2xi32, #tpu.memory_space<smem>>, %arg4: memref<2xi32, #tpu.memory_space<smem>>) -> (i32, i32, i32) {
    %0 = arith.index_cast %arg0 : i32 to index
    %1 = memref.load %arg3[%0] : memref<2xi32, #tpu.memory_space<smem>>
    %c1_i32 = arith.constant 1 : i32
    %2 = arith.subi %1, %c1_i32 : i32
    %c0_i32 = arith.constant 0 : i32
    %3 = arith.maxsi %2, %c0_i32 : i32
    %4 = arith.minsi %arg1, %3 : i32
    %5 = arith.index_cast %arg0 : i32 to index
    %6 = memref.load %arg4[%5] : memref<2xi32, #tpu.memory_space<smem>>
    %7 = arith.addi %6, %4 : i32
    %c3_i32 = arith.constant 3 : i32
    %8 = arith.minsi %7, %c3_i32 : i32
    %c0_i32_0 = arith.constant 0 : i32
    %c0_i32_1 = arith.constant 0 : i32
    %c0_i32_2 = arith.constant 0 : i32
    return %8, %c0_i32_0, %c0_i32_1 : i32, i32, i32
  }
}

</mosaic_0001>

<bundles_post_ra>
// kernel: tpu_custom_call.1
= control target key start
LH: loop header
LB: loop body
LE: loop exit
PB: predicated region body
PF: predicated region fallthrough
CT: control target
= control target key end

     0   :  { %s3229_s0 = inlined_call_operand.vmem [shape: s32[2], index: 0, kind: input, shape index: {}]   ;;  %s3230_s2 = inlined_call_operand.vmem [shape: f32[18,2,128], index: 2, kind: input, shape index: {}]   ;;  %s3231_s3 = inlined_call_operand.vmem [shape: f32[2,256], index: 3, kind: input, shape index: {}]   ;;  %s3232_s4 = inlined_call_operand.vmem [shape: bf16[4,512,16], index: 4, kind: input, shape index: {}]   ;;  %s3233_s5 = inlined_call_operand.hbm [shape: f32[4,32,256], index: 5, kind: output, shape index: {}]   ;;  %s3234_s1 = inlined_call_operand.vmem [shape: s32[2], index: 1, kind: input, shape index: {}]  }
   0x1   :  { %s10_s20 = sshll.u32 %s3229_s0, 4  ;;  %s14_s23 = sshll.u32 %s3234_s1, 4  ;;  %s11_s20 = int_to_ptr.vmem [resolvable:$true] %s10_s20  ;;  %s15_s23 = int_to_ptr.vmem [resolvable:$true] %s14_s23 }
   0x2   :  { %s2241_s24 = scalar_lea.vmem %s11_s20, 16  ;;  %p2246_p1 = scmp.lt.s32.totalorder %s11_s20, %s11_s20 }
   0x3   :  { %p2242_p0 = scmp.ne.s32.totalorder %s11_s20, %s2241_s24  ;;  %p2247_p2 = scmp.lt.s32.totalorder %s2241_s24, %s2241_s24 }
   0x5   :  { %p2248_p3 = por %p2247_p2, %p2246_p1 }
   0x7   :  { %p2249_p4 = pnand %p2248_p3, %p2242_p0 }
   0x9   :  { %2252 = shalt.err (!%p2249_p4)  }
   0xa   :  { %s2379_s25 = smov [#allocation3]   ;;  %s2253_s26 = scalar_lea.vmem %s15_s23, 16 }
   0xb   :  { %13 = dma.vmem_to_smem %s11_s20, 16, %s2379_s25, [#allocation2] }
   0xc   :  { %p2254_p5 = scmp.ne.s32.totalorder %s15_s23, %s2253_s26  ;;  %p2258_p6 = scmp.lt.s32.totalorder %s15_s23, %s15_s23 }
   0xd   :  { %p2259_p7 = scmp.lt.s32.totalorder %s2253_s26, %s2253_s26 }
   0xf   :  { %p2260_p8 = por %p2259_p7, %p2258_p6 }
  0x11   :  { %p2261_p9 = pnand %p2260_p8, %p2254_p5 }
  0x13   :  { %2264 = shalt.err (!%p2261_p9)  }
  0x14   :  { %s2380_s0 = smov [#allocation4]  }
  0x15   :  { %17 = dma.vmem_to_smem %s15_s23, 16, %s2380_s0, [#allocation2] }
  0x16   :  { %2333 = dma.done.wait [#allocation2], 32 }
  0x17   :  { %2334 = vsyncadd [#allocation2], 4294967264 }
  0x18   :  { %19 = sfence }
  0x19   :  { %20 = vsyncpa [#allocation6], 0 }
  0x1a   :  { %22 = vsyncpa [#allocation6 + $0x1], 0  ;;  %s2423_s1 = smov 0   ;;  %s2425_s27 = smov 0  }
  0x1b   :  { %s2427_s28 = smov 0   ;;  %s2429_s29 = smov 0  }
  0x1c   :  { %s2431_s30 = smov 0   ;;  %s2433_s6 = smov 0  }
  0x1d   :  { %s2435_s7 = smov 0   ;;  %s2437_s8 = smov 0  }
  0x1e   :  { %s2439_s9 = smov 0   ;;  %s2441_s10 = smov 0  }
  0x1f LB: > { %3241 = sst [smem:[#allocation11_spill]] %s2373_s9  ;;  %s2013_s11 = sadd.s32 4294967295, %s2377_s10   ;;  %s2377_s10 = sphi %s2441_s10, %s28_s10   ;;  %s2373_s9 = sphi %s2439_s9, %s3256_s9   ;;  %s2369_s8 = sphi %s2437_s8, %s3263_s8   ;;  %s2365_s7 = sphi %s2435_s7, %s3262_s7   ;;  %s2361_s6 = sphi %s2433_s6, %s3253_s6   ;;  %s2357_s30 = sphi %s2431_s30, %s3261_s30   ;;  %s2353_s29 = sphi %s2429_s29, %s3260_s29   ;;  %s2349_s28 = sphi %s2427_s28, %s3259_s28   ;;  %s2345_s27 = sphi %s2425_s27, %s3258_s27   ;;  %s2341_s1 = sphi %s2423_s1, %s3257_s1  }
  0x20   : > { %s40_s12 = sadd.s32 1, %s2365_s7  ;;  %s43_s13 = sadd.s32 1, %s2369_s8 }
  0x21   : > { %p41_p10 = scmp.ge.s32.totalorder %s40_s12, 3  ;;  %s2014_s14 = sadd.s32 4294967294, %s2377_s10  }
  0x22   : > { %s156_s15 = sld [smem:[#allocation3 + %s2373_s9]]  ;;  %s47_s16 = sadd.s32 1, %s2373_s9 }
  0x23   : > { %s3265_s12 = smov (%p41_p10, %s40_s12), 0  ;;  %s3267_s13 = smov (!%p41_p10, %s43_s13), %s2369_s8 }
  0x24   : > { %3242 = sst [smem:[#allocation12_spill]] %s3265_s12  ;;  %p189_p11 = scmp.ne.s32.totalorder %s2349_s28, %s2345_s27 }
  0x25   : > { %p45_p12 = scmp.ge.s32.totalorder %s3267_s13, 3  ;;  %p190_p13 = scmp.eq.s32.totalorder %s2013_s11, 17 }
  0x26   : > { %p195_p0 = scmp.ne.s32.totalorder %s2345_s27, %s2341_s1  ;;  %p196_p1 = scmp.eq.s32.totalorder %s2014_s14, 17 }
  0x27   : > { %s3269_s16 = smov (!%p45_p12, %s47_s16), %s2373_s9  ;;  %p2488_p2 = por %p190_p13, %p189_p11 }
  0x28   : > { %s2017_s17 = sadd.s32 4294967295, %s156_s15  ;;  %p49_p3 = scmp.ge.s32.totalorder %s3269_s16, 2 }
  0x29   : > { %p158_p4 = scmp.gt.s32.totalorder %s2017_s17, 0  ;;  %s162_s19 = sld [smem:[#allocation4 + %s2373_s9]] }
  0x2a   : > { %p2493_p5 = por %p196_p1, %p195_p0  ;;  %s3271_s16 = smov (%p49_p3, %s3269_s16), 0 }
  0x2b   : > { %3245 = sst [smem:[#allocation13_spill]] %s3271_s16  ;;  %s3273_s17 = smov (!%p158_p4, %s2017_s17), 0 }
  0x2c   : > { %s166_s21 = sld [smem:[#allocation3 + %s3271_s16]]  ;;  %p2021_p6 = scmp.ge.s32.totalorder %s2377_s10, 1 }
  0x2d   : > { %p160_p7 = scmp.lt.s32.totalorder %s2369_s8, %s3273_s17  ;;  %p264_p8 = scmp.lt.s32.totalorder %s2377_s10, 19 }
  0x2e   : > { %s3275_s13 = smov (%p45_p12, %s3267_s13), 0  ;;  %s172_s25 = sld [smem:[#allocation4 + %s3271_s16]] }
  0x2f   : > { %s161_s22 = scalar_select %p160_p7, %s2369_s8, %s3273_s17 }
  0x30   : > { %p2504_p9 = pnand %p2021_p6, %p264_p8  ;;  %3247 = sst [smem:[#allocation14_spill]] %s3275_s13 }
  0x31   : > { %s163_s26 = sadd.s32 %s162_s19, %s161_s22  ;;  %s179_s15 = sadd.s32 1, %s2349_s28 }
  0x32   : > { %s2018_s24 = sadd.s32 4294967295, %s166_s21  ;;  %p164_p11 = scmp.lt.s32.totalorder %s163_s26, 3 }
  0x33   : > { %p168_p10 = scmp.gt.s32.totalorder %s2018_s24, 0  ;;  %s3237_s19 = sand.u32 (!%p2504_p9), 1, %s2345_s27  }
  0x34   : > { %s3279_s26 = smov (!%p164_p11, %s163_s26), 3  ;;  %s308_s21 = smul.u32 (!%p2504_p9), 9, %s2361_s6 }
  0x35   : > { %s3277_s24 = smov (!%p168_p10, %s2018_s24), 0  ;;  %s2022_s22 = sshll.u32 (!%p2504_p9), %s3237_s19, 6 }
  0x36   : > { %p170_p13 = scmp.lt.s32.totalorder %s3275_s13, %s3277_s24 }
  0x38   : > { %s171_s0 = scalar_select %p170_p13, %s3275_s13, %s3277_s24 }
  0x39   : > { %s309_s24 = smul.u32 (!%p2504_p9), 3, %s2357_s30  ;;  %s2542_s13 = scalar_lea.vmem (!%p2504_p9), [#allocation5], %s2022_s22 }
  0x3a   : > { %s173_s11 = sadd.s32 %s172_s25, %s171_s0  ;;  %s320_s25 = sld [smem:[#allocation3 + %s2361_s6]] (!%p2504_p9) }
  0x3b   : > { %p174_p0 = scmp.lt.s32.totalorder %s173_s11, 3  ;;  %268 = sbr.rel (%p2504_p9) target bundleno = 673 (0x2a1), region = 32 }
  0x3c   : > { %s310_s23 = sadd.s32 (!%p2504_p9), %s309_s24, %s308_s21  ;;  %s360_s0 = sld [smem:[#allocation3 + %s2361_s6]] (!%p2504_p9) }
  0x3d   : > { %s3281_s11 = smov (!%p174_p0, %s173_s11), 3 }
  0x3e   : > { %s176_s14 = ssub.s32 %s3279_s26, %s3281_s11  ;;  %s311_s26 = sadd.s32 (!%p2504_p9), %s2353_s29, %s310_s23 }
  0x3f   : > { %p177_p1 = scmp.eq.s32.totalorder %s176_s14, 0  ;;  %p312_p12 = scmp.lt.s32.totalorder (!%p2504_p9), %s311_s26, 17 }
  0x40   : > { %s2024_s11 = sadd.s32 (!%p2504_p9), 4294967295, %s320_s25  ;;  %s328_s14 = sld [smem:[#allocation4 + %s2361_s6]] (!%p2504_p9) }
  0x41   : > { %s2516_s17 = scalar_select %p177_p1, %s2349_s28, %s179_s15  }
  0x42   : > { %s3283_s26 = smov (!%p312_p12, %s311_s26), 17  ;;  %p322_p3 = scmp.gt.s32.totalorder %s2024_s11, 0 }
  0x43   : > { %s2023_s15 = sshll.u32 %s3283_s26, 1  ;;  %p361_p4 = scmp.lt.s32.totalorder %s2357_s30, %s360_s0 }
  0x44   : > { %s315_s12 = scalar_lea.vmem %s3230_s2, %s2023_s15  ;;  %s3285_s11 = smov (!%p322_p3, %s2024_s11), 0 }
  0x45   : > { %p362_p6 = scmp.lt.s32.totalorder %s2353_s29, %s360_s0  ;;  %p324_p7 = scmp.lt.s32.totalorder %s2357_s30, %s320_s25 }
  0x46   : > { %p325_p8 = scmp.lt.s32.totalorder %s2353_s29, %s3285_s11 }
  0x47   : > { %p363_p9 = pnand %p362_p6, %p361_p4 }
  0x48   : > { %s326_s21 = scalar_select %p325_p8, %s2353_s29, %s3285_s11 }
  0x4a   : > { %s3287_s21 = smov (!%p324_p7, %s326_s21), %s3285_s11 }
  0x4b   : > { %s329_s24 = sadd.s32 %s328_s14, %s3287_s21  ;;  %366 = sbr.rel (%p363_p9) target bundleno = 635 (0x27b), region = 36 }
  0x4c   : > { %p330_p10 = scmp.lt.s32.totalorder %s329_s24, 3 }
  0x4e   : > { %s3289_s24 = smov (!%p330_p10, %s329_s24), 3 }
  0x4f   : > { %s3291_s24 = smov (!%p330_p10, %s3289_s24), 3 }
  0x50   : > { %s2103_s23 = sshll.u32 %s3291_s24, 8 }
  0x51   : > { %s2540_s9 = scalar_lea.vmem %s3232_s4, %s2103_s23 }
  0x52   : > { %v367_v0 = vld [vmem:[%s315_s12] sm:$0x3]  ;;  %v2381_v1 = vmov 0   ;;  %v2382_v2 = vmov 2   ;;  %v2383_v3 = vmov 1   ;;  %v441_v4 = vlaneseq  ;;  %p1727_p11 = scmp.eq.s32.totalorder %s2353_s29, 0 }
  0x53   : > { %2205 = vset.pattern.permute.xlu0 %v2381_v1  ;;  %2207 = vset.pattern.permute.xlu1 %v2382_v2  ;;  %v432_v8 = vld [vmem:[%s3231_s3] ss:$2 sm:$0x3]  ;;  %v2030_v9 = vld [vmem:[%s3231_s3 + $0x1] ss:$2 sm:$0x3] }
  0x54   : > { %437 = vperm.xlu0 %2205, %v367_v0   ;;  %473 = vperm.xlu1 %2207, %v367_v0   ;;  %v442_v5 = vshrl.u32 %v441_v4, 7  ;;  %v2209_v62 = vld [vmem:[%s2540_s9] sm:$0xff]   ;;  %vm701_vm0 = vcmask 130048   ;;  %v2214_v4 = vld [vmem:[%s2540_s9 + $0x90] sm:$0xff]   ;;  %vm1811_vm2 = vcmask 1041409   ;;  %vm1813_vm3 = vcmask 1042434  }
  0x55   : > { %830 = vmatprep.mubr.bf16.mxu0 %v2381_v1  ;;  %990 = vmatprep.mubr.bf16.mxu1 %v2381_v1  ;;  %v2210_v63 = vld [vmem:[%s2540_s9 + $0x80] sm:$0xff]   ;;  %vm1815_vm4 = vcmask 1043459   ;;  %vm1817_vm5 = vcmask 1044484   ;;  %vm1819_vm6 = vcmask 1045509   ;;  %vm1821_vm7 = vcmask 1046534  }
  0x56   : > { %v443_v6 = vsub.s32 0, %v442_v5  ;;  %v447_v7 = vsub.s32 1, %v442_v5  ;;  %v488_v27 = vadd.s32 8, %v442_v5  ;;  %v2553_v32 = vcvt.s32.f32 %v442_v5  ;;  %v2215_v5 = vld [vmem:[%s2540_s9 + $0x18] sm:$0xff]  }
  0x57   : > { %vm1823_vm8 = vcmask 1047559  }
  0x58   : > { %2206 = vset.pattern.permute.xlu0 %v2383_v3  ;;  %v444_v11 = vrot.slane %v432_v8, %v443_v6  ;;  %v448_v12 = vrot.slane %v432_v8, %v447_v7  ;;  %v461_v13 = vrot.slane %v2030_v9, %v443_v6  ;;  %v465_v14 = vrot.slane %v2030_v9, %v447_v7  ;;  %v2213_v3 = vld [vmem:[%s2540_s9 + $0x10] sm:$0xff]   ;;  %v2218_v8 = vld [vmem:[%s2540_s9 + $0xa0] sm:$0xff]   ;;  %v2219_v9 = vld [vmem:[%s2540_s9 + $0x28] sm:$0xff]  }
  0x59   : > { %454 = vperm.xlu0 %2206, %v367_v0   ;;  %v2555_v33 = vcvt.s32.f32 %v488_v27  ;;  %v2211_v0 = vld [vmem:[%s2540_s9 + $0x8] sm:$0xff]   ;;  %v2237_v27 = vld [vmem:[%s2540_s9 + $0x70] sm:$0xff]  }
  0x5d   : > { %2208 = vset.pattern.permute.xlu0 %v2382_v2  ;;  %v2212_v2 = vld [vmem:[%s2540_s9 + $0x88] sm:$0xff]  }
  0xd3   : > { %v438_v10 = vpop.permute.xlu0 %437  ;;  %v474_v20 = vpop.permute.xlu1 %473 }
  0xd4   : > { %v451_v16 = vmul.f32 %v444_v11, %v438_v10  ;;  %v452_v17 = vmul.f32 %v448_v12, %v438_v10  ;;  %v2220_v10 = vld [vmem:[%s2540_s9 + $0xa8] sm:$0xff]   ;;  %v2221_v11 = vld [vmem:[%s2540_s9 + $0x30] sm:$0xff]  }
  0xd5   : > { %v2222_v12 = vld [vmem:[%s2540_s9 + $0xb0] sm:$0xff]  }
  0xd8   : > { %v455_v15 = vpop.permute.xlu0 %454 }
  0xd9   : > { %v468_v18 = vmul.f32 %v461_v13, %v455_v15  ;;  %v469_v19 = vmul.f32 %v465_v14, %v455_v15  ;;  %v2223_v13 = vld [vmem:[%s2540_s9 + $0x38] sm:$0xff]   ;;  %v2225_v15 = vld [vmem:[%s2540_s9 + $0x40] sm:$0xff]  }
  0xda   : > { %v2224_v14 = vld [vmem:[%s2540_s9 + $0xb8] sm:$0xff]  }
  0xdb   : > { %v470_v21 = vadd.f32 %v468_v18, %v451_v16  ;;  %v471_v22 = vadd.f32 %v469_v19, %v452_v17  ;;  %v2226_v16 = vld [vmem:[%s2540_s9 + $0xc0] sm:$0xff]   ;;  %v2227_v17 = vld [vmem:[%s2540_s9 + $0x48] sm:$0xff]   ;;  %v2229_v19 = vld [vmem:[%s2540_s9 + $0x50] sm:$0xff]  }
  0xdc   : > { %v2228_v18 = vld [vmem:[%s2540_s9 + $0xc8] sm:$0xff]  }
  0xdd   : > { %v476_v23 = vadd.f32 %v474_v20, %v470_v21  ;;  %v477_v24 = vadd.f32 %v474_v20, %v471_v22  ;;  %v2230_v20 = vld [vmem:[%s2540_s9 + $0xd0] sm:$0xff]   ;;  %v2231_v21 = vld [vmem:[%s2540_s9 + $0x58] sm:$0xff]  }
  0xde   : > { %v2232_v22 = vld [vmem:[%s2540_s9 + $0xd8] sm:$0xff]  }
  0xdf   : > { %v478_v25 = vadd.f32 1.0, %v476_v23  ;;  %v479_v26 = vadd.f32 1.0, %v477_v24  ;;  %v2233_v23 = vld [vmem:[%s2540_s9 + $0x60] sm:$0xff]  }
  0xe0   : > { %v2234_v24 = vld [vmem:[%s2540_s9 + $0xe0] sm:$0xff]  }
  0xe1   : > { %v480_v28 = vmul.f32 16.0, %v478_v25  ;;  %v481_v29 = vmul.f32 16.0, %v479_v26  ;;  %v2235_v25 = vld [vmem:[%s2540_s9 + $0x68] sm:$0xff]  }
  0xe2   : > { %v2236_v26 = vld [vmem:[%s2540_s9 + $0xe8] sm:$0xff]  }
  0xe3   : > { %v2031_v30 = vadd.f32 -1.0, %v480_v28  ;;  %v2032_v31 = vadd.f32 -1.0, %v481_v29  ;;  %v2238_v28 = vld [vmem:[%s2540_s9 + $0xf0] sm:$0xff]   ;;  %v2239_v29 = vld [vmem:[%s2540_s9 + $0x78] sm:$0xff]  }
  0xe5   : > { %v484_v34 = vmul.f32 0.5, %v2031_v30  ;;  %v485_v35 = vmul.f32 0.5, %v2032_v31  ;;  %v2240_v30 = vld [vmem:[%s2540_s9 + $0xf8] sm:$0xff]  }
  0xe7   : > { %v494_v36 = vrot.slane %v484_v34, %v443_v6  ;;  %v498_v37 = vrot.slane %v485_v35, %v443_v6  ;;  %v2557_v38 = vrot.slane %v484_v34, %v447_v7  ;;  %v2559_v39 = vrot.slane %v485_v35, %v447_v7  ;;  %v2216_v6 = vld [vmem:[%s2540_s9 + $0x98] sm:$0xff]   ;;  %v2217_v7 = vld [vmem:[%s2540_s9 + $0x20] sm:$0xff]   ;;  %s1736_s9 = scalar_select %p1727_p11, 1, 0 }
  0xe9   : > { %v525_v40 = vsub.f32 %v2557_v38, %v2553_v32  ;;  %v526_v41 = vsub.f32 %v2559_v39, %v2553_v32  ;;  %v527_v42 = vsub.f32 %v2557_v38, %v2555_v33  ;;  %v528_v43 = vsub.f32 %v2559_v39, %v2555_v33 }
  0xea   : > { %v500_v44 = vsub.f32 %v498_v37, %v2553_v32  ;;  %v502_v45 = vsub.f32 %v498_v37, %v2555_v33  ;;  %v499_v46 = vsub.f32 %v494_v36, %v2553_v32  ;;  %v501_v47 = vsub.f32 %v494_v36, %v2555_v33 }
  0xeb   : > { %v529_v31 = vand.u32 2147483647, %v525_v40  ;;  %v531_v34 = vand.u32 2147483647, %v527_v42  ;;  %v530_v35 = vand.u32 2147483647, %v526_v41 }
  0xec   : > { %v504_v48 = vand.u32 2147483647, %v500_v44  ;;  %v506_v49 = vand.u32 2147483647, %v502_v45  ;;  %v503_v50 = vand.u32 2147483647, %v499_v46  ;;  %v1737_v46 = vstv %s1736_s9 }
  0xed   : > { %v505_v53 = vand.u32 2147483647, %v501_v47  ;;  %v533_v36 = vsub.f32 1.0, %v529_v31  ;;  %v535_v37 = vsub.f32 1.0, %v531_v34  ;;  %v534_v44 = vsub.f32 1.0, %v530_v35 }
  0xee   : > { %v508_v51 = vsub.f32 1.0, %v504_v48  ;;  %v510_v52 = vsub.f32 1.0, %v506_v49  ;;  %v507_v54 = vsub.f32 1.0, %v503_v50  ;;  %vm2688_vm1 = vcmp.eq.s32.totalorder %v1737_v46, 1 }
  0xef   : > { %v509_v57 = vsub.f32 1.0, %v505_v53  ;;  %v2680_v48 = vmax.f32 %v533_v36, 0.0  ;;  %v2682_v38 = vmax.f32 %v535_v37, 0.0  ;;  %v2684_v32 = vmax.f32 %v534_v44, 0.0 }
  0xf0   : > { %v512_v55 = vmax.f32 %v508_v51, 0.0  ;;  %v514_v56 = vmax.f32 %v510_v52, 0.0  ;;  %v511_v58 = vmax.f32 %v507_v54, 0.0 }
  0xf1   : > { %v513_v60 = vmax.f32 %v509_v57, 0.0 }
  0xf2   : > { %v516_v59 = vpack.c.bf16 %v514_v56, %v512_v55 }
  0xf3   : > { %v515_v61 = vpack.c.bf16 %v513_v60, %v511_v58  ;;  %v2701_v60 = vld [vmem:[%s2542_s13] sm:$0xff] }
  0xf4   : > { %798 = vmatprep.subr.bf16.mxu0 %v516_v59  ;;  %2105 = vmatprep.subr.bf16.mxu1 %v516_v59 }
  0xf5   : > { %799 = vmatpush1.bf16.msra.mxu0 %v515_v61  ;;  %2106 = vmatpush1.bf16.msra.mxu1 %v515_v61  ;;  %v2704_v61 = vld [vmem:[%s2542_s13 + $0x20] sm:$0xff] }
  0xf8   : > { %2065 = vmatmul.mubr.msk.bf16.vlgmr.msra.gmra.mrb[0].mxu0 %vm701_vm0, %v2209_v62  ;;  %2081 = vmatmul.mubr.msk.bf16.vlgmr.msra.gmra.mrb[0].mxu1 %vm701_vm0, %v2210_v63 }
  0xf9   : > { %840 = vmatprep.mubr.bf16.mxu0 %v2381_v1  ;;  %1000 = vmatprep.mubr.bf16.mxu1 %v2381_v1 }
 0x100   : > { %2066 = vmatmul.mubr.msk.bf16.gmra.mrb[4].mxu0 %vm701_vm0, %v2211_v0  ;;  %2082 = vmatmul.mubr.msk.bf16.gmra.mrb[4].mxu1 %vm701_vm0, %v2212_v2  ;;  %v2707_v0 = vld [vmem:[%s2542_s13 + $0x8] sm:$0xff] }
 0x101   : > { %850 = vmatprep.mubr.bf16.mxu0 %v2381_v1  ;;  %1010 = vmatprep.mubr.bf16.mxu1 %v2381_v1  ;;  %v2710_v2 = vld [vmem:[%s2542_s13 + $0x28] sm:$0xff] }
 0x108   : > { %2067 = vmatmul.mubr.msk.bf16.gmra.mrb[8].mxu0 %vm701_vm0, %v2213_v3  ;;  %2083 = vmatmul.mubr.msk.bf16.gmra.mrb[8].mxu1 %vm701_vm0, %v2214_v4 }
 0x109   : > { %860 = vmatprep.mubr.bf16.mxu0 %v2381_v1  ;;  %1020 = vmatprep.mubr.bf16.mxu1 %v2381_v1 }
 0x110   : > { %2068 = vmatmul.mubr.msk.bf16.gmra.mrb[12].mxu0 %vm701_vm0, %v2215_v5  ;;  %2084 = vmatmul.mubr.msk.bf16.gmra.mrb[12].mxu1 %vm701_vm0, %v2216_v6 }
 0x111   : > { %870 = vmatprep.mubr.bf16.mxu0 %v2381_v1  ;;  %1030 = vmatprep.mubr.bf16.mxu1 %v2381_v1 }
 0x118   : > { %2069 = vmatmul.mubr.msk.bf16.gmra.mrb[16].mxu0 %vm701_vm0, %v2217_v7  ;;  %2085 = vmatmul.mubr.msk.bf16.gmra.mrb[16].mxu1 %vm701_vm0, %v2218_v8  ;;  %v1739_v7 = vsel %vm2688_vm1, -inf, %v2701_v60  ;;  %v1743_v8 = vsel %vm2688_vm1, -inf, %v2704_v61 }
 0x119   : > { %880 = vmatprep.mubr.bf16.mxu0 %v2381_v1  ;;  %1040 = vmatprep.mubr.bf16.mxu1 %v2381_v1 }
 0x120   : > { %2070 = vmatmul.mubr.msk.bf16.gmra.mrb[20].mxu0 %vm701_vm0, %v2219_v9  ;;  %2086 = vmatmul.mubr.msk.bf16.gmra.mrb[20].mxu1 %vm701_vm0, %v2220_v10 }
 0x121   : > { %890 = vmatprep.mubr.bf16.mxu0 %v2381_v1  ;;  %1050 = vmatprep.mubr.bf16.mxu1 %v2381_v1 }
 0x128   : > { %2071 = vmatmul.mubr.msk.bf16.gmra.mrb[24].mxu0 %vm701_vm0, %v2221_v11  ;;  %2087 = vmatmul.mubr.msk.bf16.gmra.mrb[24].mxu1 %vm701_vm0, %v2222_v12 }
 0x129   : > { %900 = vmatprep.mubr.bf16.mxu0 %v2381_v1  ;;  %1060 = vmatprep.mubr.bf16.mxu1 %v2381_v1 }
 0x130   : > { %2072 = vmatmul.mubr.msk.bf16.gmra.mrb[28].mxu0 %vm701_vm0, %v2223_v13  ;;  %2088 = vmatmul.mubr.msk.bf16.gmra.mrb[28].mxu1 %vm701_vm0, %v2224_v14  ;;  %v1740_v13 = vsel %vm2688_vm1, -inf, %v2707_v0  ;;  %v1744_v14 = vsel %vm2688_vm1, -inf, %v2710_v2 }
 0x131   : > { %910 = vmatprep.mubr.bf16.mxu0 %v2381_v1  ;;  %1070 = vmatprep.mubr.bf16.mxu1 %v2381_v1 }
 0x138   : > { %2073 = vmatmul.mubr.msk.bf16.gmra.mrb[32].mxu0 %vm701_vm0, %v2225_v15  ;;  %2089 = vmatmul.mubr.msk.bf16.gmra.mrb[32].mxu1 %vm701_vm0, %v2226_v16 }
 0x139   : > { %920 = vmatprep.mubr.bf16.mxu0 %v2381_v1  ;;  %1080 = vmatprep.mubr.bf16.mxu1 %v2381_v1 }
 0x140   : > { %2074 = vmatmul.mubr.msk.bf16.gmra.mrb[36].mxu0 %vm701_vm0, %v2227_v17  ;;  %2090 = vmatmul.mubr.msk.bf16.gmra.mrb[36].mxu1 %vm701_vm0, %v2228_v18 }
 0x141   : > { %930 = vmatprep.mubr.bf16.mxu0 %v2381_v1  ;;  %1090 = vmatprep.mubr.bf16.mxu1 %v2381_v1 }
 0x148   : > { %2075 = vmatmul.mubr.msk.bf16.gmra.mrb[40].mxu0 %vm701_vm0, %v2229_v19  ;;  %2091 = vmatmul.mubr.msk.bf16.gmra.mrb[40].mxu1 %vm701_vm0, %v2230_v20 }
 0x149   : > { %940 = vmatprep.mubr.bf16.mxu0 %v2381_v1  ;;  %1100 = vmatprep.mubr.bf16.mxu1 %v2381_v1 }
 0x150   : > { %2076 = vmatmul.mubr.msk.bf16.gmra.mrb[44].mxu0 %vm701_vm0, %v2231_v21  ;;  %2092 = vmatmul.mubr.msk.bf16.gmra.mrb[44].mxu1 %vm701_vm0, %v2232_v22 }
 0x151   : > { %950 = vmatprep.mubr.bf16.mxu0 %v2381_v1  ;;  %1110 = vmatprep.mubr.bf16.mxu1 %v2381_v1 }
 0x158   : > { %2077 = vmatmul.mubr.msk.bf16.gmra.mrb[48].mxu0 %vm701_vm0, %v2233_v23  ;;  %2093 = vmatmul.mubr.msk.bf16.gmra.mrb[48].mxu1 %vm701_vm0, %v2234_v24 }
 0x159   : > { %960 = vmatprep.mubr.bf16.mxu0 %v2381_v1  ;;  %1120 = vmatprep.mubr.bf16.mxu1 %v2381_v1 }
 0x160   : > { %2078 = vmatmul.mubr.msk.bf16.gmra.mrb[52].mxu0 %vm701_vm0, %v2235_v25  ;;  %2094 = vmatmul.mubr.msk.bf16.gmra.mrb[52].mxu1 %vm701_vm0, %v2236_v26 }
 0x161   : > { %970 = vmatprep.mubr.bf16.mxu0 %v2381_v1  ;;  %1130 = vmatprep.mubr.bf16.mxu1 %v2381_v1 }
 0x168   : > { %2079 = vmatmul.mubr.msk.bf16.gmra.mrb[56].mxu0 %vm701_vm0, %v2237_v27  ;;  %2095 = vmatmul.mubr.msk.bf16.gmra.mrb[56].mxu1 %vm701_vm0, %v2238_v28 }
 0x169   : > { %980 = vmatprep.mubr.bf16.mxu0 %v2381_v1  ;;  %1140 = vmatprep.mubr.bf16.mxu1 %v2381_v1  ;;  %v532_v1 = vand.u32 2147483647, %v528_v43  ;;  %v3248_v43 = vmov 0 }
 0x16a   : > { %v3249_v43 = vsel %vm2688_vm1, 4294967295, %v3248_v43 }
 0x16b   : > { %v536_v45 = vsub.f32 1.0, %v532_v1  ;;  %3250 = vst [vmem:[#allocation15_spill] sm:$0xff] %v3249_v43 }
 0x16d   : > { %v2686_v33 = vmax.f32 %v536_v45, 0.0 }
 0x170   : > { %2080 = vmatmul.mubr.msk.bf16.gmra.mrb[60].mxu0 %vm701_vm0, %v2239_v29  ;;  %2096 = vmatmul.mubr.msk.bf16.gmra.mrb[60].mxu1 %vm701_vm0, %v2240_v30 }
 0x1cb   : > { %v832_v47 = vpop.f32.mrb[0].mxu0  ;;  %v992_v40 = vpop.f32.mrb[0].mxu1 }
 0x1cc   : > { %v834_v42 = vpop.f32.mrb[1].mxu0  ;;  %v994_v49 = vpop.f32.mrb[1].mxu1  ;;  %v1151_v50 = vmul.f32 %v832_v47, %v2680_v48  ;;  %v1215_v51 = vmul.f32 %v992_v40, %v2680_v48 }
 0x1cd   : > { %v836_v39 = vpop.f32.mrb[2].mxu0  ;;  %v996_v41 = vpop.f32.mrb[2].mxu1  ;;  %v1152_v56 = vmul.f32 %v834_v42, %v2684_v32  ;;  %v1216_v57 = vmul.f32 %v994_v49, %v2684_v32 }
 0x1ce   : > { %v1153_v52 = vmul.f32 %v836_v39, %v2682_v38  ;;  %v1217_v53 = vmul.f32 %v996_v41, %v2682_v38  ;;  %v838_v54 = vpop.f32.mrb[3].mxu0  ;;  %v998_v55 = vpop.f32.mrb[3].mxu1 }
 0x1cf   : > { %v1154_v58 = vmul.f32 %v838_v54, %v2686_v33  ;;  %v1218_v59 = vmul.f32 %v998_v55, %v2686_v33 }
 0x1d0   : > { %v1279_v62 = vadd.f32 %v1153_v52, %v1151_v50  ;;  %v1503_v63 = vadd.f32 %v1217_v53, %v1215_v51 }
 0x1d1   : > { %v1286_v3 = vadd.f32 %v1154_v58, %v1152_v56  ;;  %v1510_v4 = vadd.f32 %v1218_v59, %v1216_v57 }
 0x1d2   : > { %v1280_v5 = vrot.slane %v1279_v62, 4  ;;  %v1504_v6 = vrot.slane %v1503_v63, 4 }
 0x1d3   : > { %v1287_v9 = vrot.slane %v1286_v3, 4  ;;  %v1511_v10 = vrot.slane %v1510_v4, 4  ;;  %v842_v11 = vpop.f32.mrb[4].mxu0  ;;  %v1002_v12 = vpop.f32.mrb[4].mxu1 }
 0x1d4   : > { %v1281_v15 = vadd.f32 %v1280_v5, %v1279_v62  ;;  %v1505_v16 = vadd.f32 %v1504_v6, %v1503_v63  ;;  %v1155_v17 = vmul.f32 %v842_v11, %v2680_v48  ;;  %v1219_v18 = vmul.f32 %v1002_v12, %v2680_v48  ;;  %v844_v19 = vpop.f32.mrb[5].mxu0  ;;  %v1004_v20 = vpop.f32.mrb[5].mxu1 }
 0x1d5   : > { %v1288_v21 = vadd.f32 %v1287_v9, %v1286_v3  ;;  %v1512_v22 = vadd.f32 %v1511_v10, %v1510_v4  ;;  %v1156_v23 = vmul.f32 %v844_v19, %v2684_v32  ;;  %v1220_v24 = vmul.f32 %v1004_v20, %v2684_v32  ;;  %v846_v25 = vpop.f32.mrb[6].mxu0  ;;  %v1006_v26 = vpop.f32.mrb[6].mxu1 }
 0x1d6   : > { %v1282_v27 = vrot.slane %v1281_v15, 2  ;;  %v1506_v28 = vrot.slane %v1505_v16, 2  ;;  %v1157_v29 = vmul.f32 %v846_v25, %v2682_v38  ;;  %v1221_v30 = vmul.f32 %v1006_v26, %v2682_v38  ;;  %v848_v31 = vpop.f32.mrb[7].mxu0  ;;  %v1008_v34 = vpop.f32.mrb[7].mxu1 }
 0x1d7   : > { %v1289_v35 = vrot.slane %v1288_v21, 2  ;;  %v1513_v1 = vrot.slane %v1512_v22, 2  ;;  %v1158_v36 = vmul.f32 %v848_v31, %v2686_v33  ;;  %v1222_v37 = vmul.f32 %v1008_v34, %v2686_v33 }
 0x1d8   : > { %v1283_v44 = vadd.f32 %v1282_v27, %v1281_v15  ;;  %v1507_v45 = vadd.f32 %v1506_v28, %v1505_v16  ;;  %v1293_v46 = vadd.f32 %v1157_v29, %v1155_v17  ;;  %v1517_v47 = vadd.f32 %v1221_v30, %v1219_v18 }
 0x1d9   : > { %v1290_v40 = vadd.f32 %v1289_v35, %v1288_v21  ;;  %v1514_v42 = vadd.f32 %v1513_v1, %v1512_v22  ;;  %v1300_v49 = vadd.f32 %v1158_v36, %v1156_v23  ;;  %v1524_v39 = vadd.f32 %v1222_v37, %v1220_v24 }
 0x1da   : > { %v1284_v41 = vrot.slane %v1283_v44, 1  ;;  %v1508_v50 = vrot.slane %v1507_v45, 1  ;;  %v1294_v51 = vrot.slane %v1293_v46, 4  ;;  %v1518_v52 = vrot.slane %v1517_v47, 4 }
 0x1db   : > { %v1291_v53 = vrot.slane %v1290_v40, 1  ;;  %v1515_v54 = vrot.slane %v1514_v42, 1  ;;  %v1301_v55 = vrot.slane %v1300_v49, 4  ;;  %v1525_v56 = vrot.slane %v1524_v39, 4  ;;  %v852_v57 = vpop.f32.mrb[8].mxu0  ;;  %v1012_v58 = vpop.f32.mrb[8].mxu1 }
 0x1dc   : > { %v1285_v59 = vadd.f32 %v1284_v41, %v1283_v44  ;;  %v1509_v62 = vadd.f32 %v1508_v50, %v1507_v45  ;;  %v1295_v63 = vadd.f32 %v1294_v51, %v1293_v46  ;;  %v1519_v3 = vadd.f32 %v1518_v52, %v1517_v47  ;;  %v854_v4 = vpop.f32.mrb[9].mxu0  ;;  %v1014_v5 = vpop.f32.mrb[9].mxu1 }
 0x1dd   : > { %v1292_v6 = vadd.f32 %v1291_v53, %v1290_v40  ;;  %v1516_v9 = vadd.f32 %v1515_v54, %v1514_v42  ;;  %v1302_v10 = vadd.f32 %v1301_v55, %v1300_v49  ;;  %v1526_v11 = vadd.f32 %v1525_v56, %v1524_v39  ;;  %v856_v12 = vpop.f32.mrb[10].mxu0  ;;  %v1016_v15 = vpop.f32.mrb[10].mxu1 }
 0x1de   : > { %v1296_v16 = vrot.slane %v1295_v63, 2  ;;  %v1520_v17 = vrot.slane %v1519_v3, 2  ;;  %v1159_v18 = vmul.f32 %v852_v57, %v2680_v48  ;;  %v1223_v19 = vmul.f32 %v1012_v58, %v2680_v48  ;;  %v858_v20 = vpop.f32.mrb[11].mxu0  ;;  %v1018_v21 = vpop.f32.mrb[11].mxu1 }
 0x1df   : > { %v1303_v22 = vrot.slane %v1302_v10, 2  ;;  %v1527_v23 = vrot.slane %v1526_v11, 2  ;;  %v1160_v24 = vmul.f32 %v854_v4, %v2684_v32  ;;  %v1224_v25 = vmul.f32 %v1014_v5, %v2684_v32 }
 0x1e0   : > { %v1297_v26 = vadd.f32 %v1296_v16, %v1295_v63  ;;  %v1521_v27 = vadd.f32 %v1520_v17, %v1519_v3  ;;  %v1161_v28 = vmul.f32 %v856_v12, %v2682_v38  ;;  %v1225_v29 = vmul.f32 %v1016_v15, %v2682_v38 }
 0x1e1   : > { %v1304_v30 = vadd.f32 %v1303_v22, %v1302_v10  ;;  %v1528_v31 = vadd.f32 %v1527_v23, %v1526_v11  ;;  %v1162_v34 = vmul.f32 %v858_v20, %v2686_v33  ;;  %v1226_v35 = vmul.f32 %v1018_v21, %v2686_v33 }
 0x1e2   : > { %v1298_v1 = vrot.slane %v1297_v26, 1  ;;  %v1522_v36 = vrot.slane %v1521_v27, 1  ;;  %v1307_v37 = vadd.f32 %v1161_v28, %v1159_v18  ;;  %v1531_v44 = vadd.f32 %v1225_v29, %v1223_v19 }
 0x1e3   : > { %v1305_v45 = vrot.slane %v1304_v30, 1  ;;  %v1529_v46 = vrot.slane %v1528_v31, 1  ;;  %v1314_v47 = vadd.f32 %v1162_v34, %v1160_v24  ;;  %v1538_v40 = vadd.f32 %v1226_v35, %v1224_v25  ;;  %v862_v42 = vpop.f32.mrb[12].mxu0  ;;  %v1022_v49 = vpop.f32.mrb[12].mxu1 }
 0x1e4   : > { %v1299_v39 = vadd.f32 %v1298_v1, %v1297_v26  ;;  %v1523_v41 = vadd.f32 %v1522_v36, %v1521_v27  ;;  %v1308_v50 = vrot.slane %v1307_v37, 4  ;;  %v1532_v51 = vrot.slane %v1531_v44, 4  ;;  %v864_v52 = vpop.f32.mrb[13].mxu0  ;;  %v1024_v53 = vpop.f32.mrb[13].mxu1 }
 0x1e5   : > { %v1306_v54 = vadd.f32 %v1305_v45, %v1304_v30  ;;  %v1530_v55 = vadd.f32 %v1529_v46, %v1528_v31  ;;  %v1315_v56 = vrot.slane %v1314_v47, 4  ;;  %v1539_v57 = vrot.slane %v1538_v40, 4  ;;  %v866_v58 = vpop.f32.mrb[14].mxu0  ;;  %v1026_v63 = vpop.f32.mrb[14].mxu1 }
 0x1e6   : > { %v1812_v3 = vsel %vm1811_vm2, %v1299_v39, %v1285_v59  ;;  %v1846_v4 = vsel %vm1811_vm2, %v1523_v41, %v1509_v62  ;;  %v1309_v5 = vadd.f32 %v1308_v50, %v1307_v37  ;;  %v1533_v10 = vadd.f32 %v1532_v51, %v1531_v44  ;;  %v868_v11 = vpop.f32.mrb[15].mxu0  ;;  %v1028_v12 = vpop.f32.mrb[15].mxu1 }
 0x1e7   : > { %v1825_v15 = vsel %vm1811_vm2, %v1306_v54, %v1292_v6  ;;  %v1853_v16 = vsel %vm1811_vm2, %v1530_v55, %v1516_v9  ;;  %v1316_v17 = vadd.f32 %v1315_v56, %v1314_v47  ;;  %v1540_v18 = vadd.f32 %v1539_v57, %v1538_v40 }
 0x1e8   : > { %v1310_v19 = vrot.slane %v1309_v5, 2  ;;  %v1534_v20 = vrot.slane %v1533_v10, 2  ;;  %v1163_v21 = vmul.f32 %v862_v42, %v2680_v48  ;;  %v1227_v22 = vmul.f32 %v1022_v49, %v2680_v48 }
 0x1e9   : > { %v1317_v23 = vrot.slane %v1316_v17, 2  ;;  %v1541_v59 = vrot.slane %v1540_v18, 2  ;;  %v1164_v62 = vmul.f32 %v864_v52, %v2684_v32  ;;  %v1228_v24 = vmul.f32 %v1024_v53, %v2684_v32 }
 0x1ea   : > { %v1311_v25 = vadd.f32 %v1310_v19, %v1309_v5  ;;  %v1535_v26 = vadd.f32 %v1534_v20, %v1533_v10  ;;  %v1165_v6 = vmul.f32 %v866_v58, %v2682_v38  ;;  %v1229_v9 = vmul.f32 %v1026_v63, %v2682_v38 }
 0x1eb   : > { %v1318_v27 = vadd.f32 %v1317_v23, %v1316_v17  ;;  %v1542_v28 = vadd.f32 %v1541_v59, %v1540_v18  ;;  %v1166_v29 = vmul.f32 %v868_v11, %v2686_v33  ;;  %v1230_v30 = vmul.f32 %v1028_v12, %v2686_v33  ;;  %v872_v31 = vpop.f32.mrb[16].mxu0  ;;  %v1032_v34 = vpop.f32.mrb[16].mxu1 }
 0x1ec   : > { %v1312_v35 = vrot.slane %v1311_v25, 1  ;;  %v1536_v1 = vrot.slane %v1535_v26, 1  ;;  %v1321_v36 = vadd.f32 %v1165_v6, %v1163_v21  ;;  %v1545_v37 = vadd.f32 %v1229_v9, %v1227_v22  ;;  %v874_v44 = vpop.f32.mrb[17].mxu0  ;;  %v1034_v45 = vpop.f32.mrb[17].mxu1 }
 0x1ed   : > { %v1319_v46 = vrot.slane %v1318_v27, 1  ;;  %v1543_v47 = vrot.slane %v1542_v28, 1  ;;  %v1328_v40 = vadd.f32 %v1166_v29, %v1164_v62  ;;  %v1552_v42 = vadd.f32 %v1230_v30, %v1228_v24  ;;  %v876_v49 = vpop.f32.mrb[18].mxu0  ;;  %v1036_v39 = vpop.f32.mrb[18].mxu1 }
 0x1ee   : > { %v1313_v41 = vadd.f32 %v1312_v35, %v1311_v25  ;;  %v1537_v50 = vadd.f32 %v1536_v1, %v1535_v26  ;;  %v1322_v51 = vrot.slane %v1321_v36, 4  ;;  %v1546_v52 = vrot.slane %v1545_v37, 4  ;;  %v878_v53 = vpop.f32.mrb[19].mxu0  ;;  %v1038_v54 = vpop.f32.mrb[19].mxu1 }
 0x1ef   : > { %v1320_v55 = vadd.f32 %v1319_v46, %v1318_v27  ;;  %v1544_v56 = vadd.f32 %v1543_v47, %v1542_v28  ;;  %v1329_v57 = vrot.slane %v1328_v40, 4  ;;  %v1553_v58 = vrot.slane %v1552_v42, 4 }
 0x1f0   : > { %v1814_v63 = vsel %vm1813_vm3, %v1313_v41, %v1812_v3  ;;  %v1847_v5 = vsel %vm1813_vm3, %v1537_v50, %v1846_v4  ;;  %v1323_v10 = vadd.f32 %v1322_v51, %v1321_v36  ;;  %v1547_v11 = vadd.f32 %v1546_v52, %v1545_v37 }
 0x1f1   : > { %v1826_v12 = vsel %vm1813_vm3, %v1320_v55, %v1825_v15  ;;  %v1854_v17 = vsel %vm1813_vm3, %v1544_v56, %v1853_v16  ;;  %v1330_v18 = vadd.f32 %v1329_v57, %v1328_v40  ;;  %v1554_v19 = vadd.f32 %v1553_v58, %v1552_v42 }
 0x1f2   : > { %v1324_v20 = vrot.slane %v1323_v10, 2  ;;  %v1548_v21 = vrot.slane %v1547_v11, 2  ;;  %v1167_v22 = vmul.f32 %v872_v31, %v2680_v48  ;;  %v1231_v23 = vmul.f32 %v1032_v34, %v2680_v48 }
 0x1f3   : > { %v1331_v59 = vrot.slane %v1330_v18, 2  ;;  %v1555_v62 = vrot.slane %v1554_v19, 2  ;;  %v1168_v3 = vmul.f32 %v874_v44, %v2684_v32  ;;  %v1232_v4 = vmul.f32 %v1034_v45, %v2684_v32  ;;  %v882_v24 = vpop.f32.mrb[20].mxu0  ;;  %v1042_v25 = vpop.f32.mrb[20].mxu1 }
 0x1f4   : > { %v1325_v26 = vadd.f32 %v1324_v20, %v1323_v10  ;;  %v1549_v15 = vadd.f32 %v1548_v21, %v1547_v11  ;;  %v1169_v16 = vmul.f32 %v876_v49, %v2682_v38  ;;  %v1233_v6 = vmul.f32 %v1036_v39, %v2682_v38  ;;  %v884_v9 = vpop.f32.mrb[21].mxu0  ;;  %v1044_v27 = vpop.f32.mrb[21].mxu1 }
 0x1f5   : > { %v1332_v28 = vadd.f32 %v1331_v59, %v1330_v18  ;;  %v1556_v29 = vadd.f32 %v1555_v62, %v1554_v19  ;;  %v1170_v30 = vmul.f32 %v878_v53, %v2686_v33  ;;  %v1234_v31 = vmul.f32 %v1038_v54, %v2686_v33  ;;  %v886_v34 = vpop.f32.mrb[22].mxu0  ;;  %v1046_v35 = vpop.f32.mrb[22].mxu1 }
 0x1f6   : > { %v1326_v1 = vrot.slane %v1325_v26, 1  ;;  %v1550_v36 = vrot.slane %v1549_v15, 1  ;;  %v1335_v37 = vadd.f32 %v1169_v16, %v1167_v22  ;;  %v1559_v44 = vadd.f32 %v1233_v6, %v1231_v23  ;;  %v888_v45 = vpop.f32.mrb[23].mxu0  ;;  %v1048_v46 = vpop.f32.mrb[23].mxu1 }
 0x1f7   : > { %v1333_v47 = vrot.slane %v1332_v28, 1  ;;  %v1557_v40 = vrot.slane %v1556_v29, 1  ;;  %v1342_v42 = vadd.f32 %v1170_v30, %v1168_v3  ;;  %v1566_v49 = vadd.f32 %v1234_v31, %v1232_v4 }
 0x1f8   : > { %v1327_v39 = vadd.f32 %v1326_v1, %v1325_v26  ;;  %v1551_v41 = vadd.f32 %v1550_v36, %v1549_v15  ;;  %v1336_v50 = vrot.slane %v1335_v37, 4  ;;  %v1560_v51 = vrot.slane %v1559_v44, 4 }
 0x1f9   : > { %v1334_v52 = vadd.f32 %v1333_v47, %v1332_v28  ;;  %v1558_v53 = vadd.f32 %v1557_v40, %v1556_v29  ;;  %v1343_v54 = vrot.slane %v1342_v42, 4  ;;  %v1567_v55 = vrot.slane %v1566_v49, 4 }
 0x1fa   : > { %v1816_v56 = vsel %vm1815_vm4, %v1327_v39, %v1814_v63  ;;  %v1848_v57 = vsel %vm1815_vm4, %v1551_v41, %v1847_v5  ;;  %v1337_v58 = vadd.f32 %v1336_v50, %v1335_v37  ;;  %v1561_v10 = vadd.f32 %v1560_v51, %v1559_v44 }
 0x1fb   : > { %v1827_v11 = vsel %vm1815_vm4, %v1334_v52, %v1826_v12  ;;  %v1855_v18 = vsel %vm1815_vm4, %v1558_v53, %v1854_v17  ;;  %v1344_v19 = vadd.f32 %v1343_v54, %v1342_v42  ;;  %v1568_v20 = vadd.f32 %v1567_v55, %v1566_v49  ;;  %v892_v21 = vpop.f32.mrb[24].mxu0  ;;  %v1052_v22 = vpop.f32.mrb[24].mxu1 }
 0x1fc   : > { %v1338_v23 = vrot.slane %v1337_v58, 2  ;;  %v1562_v59 = vrot.slane %v1561_v10, 2  ;;  %v1171_v62 = vmul.f32 %v882_v24, %v2680_v48  ;;  %v1235_v3 = vmul.f32 %v1042_v25, %v2680_v48  ;;  %v894_v4 = vpop.f32.mrb[25].mxu0  ;;  %v1054_v63 = vpop.f32.mrb[25].mxu1 }
 0x1fd   : > { %v1345_v26 = vrot.slane %v1344_v19, 2  ;;  %v1569_v5 = vrot.slane %v1568_v20, 2  ;;  %v1172_v15 = vmul.f32 %v884_v9, %v2684_v32  ;;  %v1236_v12 = vmul.f32 %v1044_v27, %v2684_v32  ;;  %v896_v16 = vpop.f32.mrb[26].mxu0  ;;  %v1056_v17 = vpop.f32.mrb[26].mxu1 }
 0x1fe   : > { %v1339_v6 = vadd.f32 %v1338_v23, %v1337_v58  ;;  %v1563_v28 = vadd.f32 %v1562_v59, %v1561_v10  ;;  %v1173_v29 = vmul.f32 %v886_v34, %v2682_v38  ;;  %v1237_v30 = vmul.f32 %v1046_v35, %v2682_v38  ;;  %v898_v31 = vpop.f32.mrb[27].mxu0  ;;  %v1058_v24 = vpop.f32.mrb[27].mxu1 }
 0x1ff   : > { %v1346_v1 = vadd.f32 %v1345_v26, %v1344_v19  ;;  %v1570_v25 = vadd.f32 %v1569_v5, %v1568_v20  ;;  %v1174_v36 = vmul.f32 %v888_v45, %v2686_v33  ;;  %v1238_v37 = vmul.f32 %v1048_v46, %v2686_v33 }
 0x200   : > { %v1340_v44 = vrot.slane %v1339_v6, 1  ;;  %v1564_v9 = vrot.slane %v1563_v28, 1  ;;  %v1349_v47 = vadd.f32 %v1173_v29, %v1171_v62  ;;  %v1573_v27 = vadd.f32 %v1237_v30, %v1235_v3 }
 0x201   : > { %v1347_v40 = vrot.slane %v1346_v1, 1  ;;  %v1571_v42 = vrot.slane %v1570_v25, 1  ;;  %v1356_v49 = vadd.f32 %v1174_v36, %v1172_v15  ;;  %v1580_v39 = vadd.f32 %v1238_v37, %v1236_v12 }
 0x202   : > { %v1341_v41 = vadd.f32 %v1340_v44, %v1339_v6  ;;  %v1565_v34 = vadd.f32 %v1564_v9, %v1563_v28  ;;  %v1350_v50 = vrot.slane %v1349_v47, 4  ;;  %v1574_v35 = vrot.slane %v1573_v27, 4 }
 0x203   : > { %v1348_v51 = vadd.f32 %v1347_v40, %v1346_v1  ;;  %v1572_v52 = vadd.f32 %v1571_v42, %v1570_v25  ;;  %v1357_v53 = vrot.slane %v1356_v49, 4  ;;  %v1581_v54 = vrot.slane %v1580_v39, 4  ;;  %v2776_v45 = vpop.f32.mrb[28].mxu0  ;;  %v2778_v46 = vpop.f32.mrb[28].mxu1 }
 0x204   : > { %v1818_v55 = vsel %vm1817_vm5, %v1341_v41, %v1816_v56  ;;  %v1849_v58 = vsel %vm1817_vm5, %v1565_v34, %v1848_v57  ;;  %v1351_v10 = vadd.f32 %v1350_v50, %v1349_v47  ;;  %v1575_v19 = vadd.f32 %v1574_v35, %v1573_v27  ;;  %v2782_v20 = vpop.f32.mrb[29].mxu0  ;;  %v2784_v23 = vpop.f32.mrb[29].mxu1 }
 0x205   : > { %v1828_v59 = vsel %vm1817_vm5, %v1348_v51, %v1827_v11  ;;  %v1856_v62 = vsel %vm1817_vm5, %v1572_v52, %v1855_v18  ;;  %v1358_v3 = vadd.f32 %v1357_v53, %v1356_v49  ;;  %v1582_v26 = vadd.f32 %v1581_v54, %v1580_v39  ;;  %v2788_v5 = vpop.f32.mrb[30].mxu0  ;;  %v2790_v15 = vpop.f32.mrb[30].mxu1 }
 0x206   : > { %v1352_v12 = vrot.slane %v1351_v10, 2  ;;  %v1576_v56 = vrot.slane %v1575_v19, 2  ;;  %v1175_v57 = vmul.f32 %v892_v21, %v2680_v48  ;;  %v1239_v6 = vmul.f32 %v1052_v22, %v2680_v48  ;;  %v908_v28 = vpop.f32.mrb[31].mxu0  ;;  %v1068_v29 = vpop.f32.mrb[31].mxu1 }
 0x207   : > { %v1359_v30 = vrot.slane %v1358_v3, 2  ;;  %v1583_v1 = vrot.slane %v1582_v26, 2  ;;  %v1176_v11 = vmul.f32 %v894_v4, %v2684_v32  ;;  %v1240_v18 = vmul.f32 %v1054_v63, %v2684_v32 }
 0x208   : > { %v1353_v25 = vadd.f32 %v1352_v12, %v1351_v10  ;;  %v1577_v36 = vadd.f32 %v1576_v56, %v1575_v19  ;;  %v1177_v37 = vmul.f32 %v896_v16, %v2682_v38  ;;  %v1241_v44 = vmul.f32 %v1056_v17, %v2682_v38 }
 0x209   : > { %v1360_v9 = vadd.f32 %v1359_v30, %v1358_v3  ;;  %v1584_v47 = vadd.f32 %v1583_v1, %v1582_v26  ;;  %v1178_v21 = vmul.f32 %v898_v31, %v2686_v33  ;;  %v1242_v22 = vmul.f32 %v1058_v24, %v2686_v33 }
 0x20a   : > { %v1354_v27 = vrot.slane %v1353_v25, 1  ;;  %v1578_v40 = vrot.slane %v1577_v36, 1  ;;  %v1363_v42 = vadd.f32 %v1177_v37, %v1175_v57  ;;  %v1587_v49 = vadd.f32 %v1241_v44, %v1239_v6 }
 0x20b   : > { %v1361_v39 = vrot.slane %v1360_v9, 1  ;;  %v1585_v4 = vrot.slane %v1584_v47, 1  ;;  %v1370_v41 = vadd.f32 %v1178_v21, %v1176_v11  ;;  %v1594_v63 = vadd.f32 %v1242_v22, %v1240_v18  ;;  %v2800_v34 = vpop.f32.mrb[32].mxu0  ;;  %v2802_v50 = vpop.f32.mrb[32].mxu1 }
 0x20c   : > { %v1355_v16 = vadd.f32 %v1354_v27, %v1353_v25  ;;  %v1579_v17 = vadd.f32 %v1578_v40, %v1577_v36  ;;  %v1364_v35 = vrot.slane %v1363_v42, 4  ;;  %v1588_v51 = vrot.slane %v1587_v49, 4  ;;  %v2804_v52 = vpop.f32.mrb[33].mxu0  ;;  %v2806_v31 = vpop.f32.mrb[33].mxu1 }
 0x20d   : > { %v1362_v24 = vadd.f32 %v1361_v39, %v1360_v9  ;;  %v1586_v53 = vadd.f32 %v1585_v4, %v1584_v47  ;;  %v1371_v54 = vrot.slane %v1370_v41, 4  ;;  %v1595_v10 = vrot.slane %v1594_v63, 4  ;;  %v2808_v19 = vpop.f32.mrb[34].mxu0  ;;  %v2810_v3 = vpop.f32.mrb[34].mxu1 }
 0x20e   : > { %v1820_v26 = vsel %vm1819_vm6, %v1355_v16, %v1818_v55  ;;  %v1850_v12 = vsel %vm1819_vm6, %v1579_v17, %v1849_v58  ;;  %v1365_v56 = vadd.f32 %v1364_v35, %v1363_v42  ;;  %v1589_v57 = vadd.f32 %v1588_v51, %v1587_v49  ;;  %v2814_v6 = vpop.f32.mrb[35].mxu0  ;;  %v2816_v30 = vpop.f32.mrb[35].mxu1 }
 0x20f   : > { %v1829_v1 = vsel %vm1819_vm6, %v1362_v24, %v1828_v59  ;;  %v1857_v11 = vsel %vm1819_vm6, %v1586_v53, %v1856_v62  ;;  %v1372_v18 = vadd.f32 %v1371_v54, %v1370_v41  ;;  %v1596_v25 = vadd.f32 %v1595_v10, %v1594_v63 }
 0x210   : > { %v1366_v36 = vrot.slane %v1365_v56, 2  ;;  %v1590_v37 = vrot.slane %v1589_v57, 2  ;;  %v1179_v44 = vmul.f32 %v2776_v45, %v2680_v48  ;;  %v1243_v55 = vmul.f32 %v2778_v46, %v2680_v48 }
 0x211   : > { %v1373_v58 = vrot.slane %v1372_v18, 2  ;;  %v1597_v9 = vrot.slane %v1596_v25, 2  ;;  %v1180_v47 = vmul.f32 %v2782_v20, %v2684_v32  ;;  %v1244_v59 = vmul.f32 %v2784_v23, %v2684_v32 }
 0x212   : > { %v1367_v21 = vadd.f32 %v1366_v36, %v1365_v56  ;;  %v1591_v62 = vadd.f32 %v1590_v37, %v1589_v57  ;;  %v1181_v22 = vmul.f32 %v2788_v5, %v2682_v38  ;;  %v1245_v27 = vmul.f32 %v2790_v15, %v2682_v38 }
 0x213   : > { %v1374_v45 = vadd.f32 %v1373_v58, %v1372_v18  ;;  %v1598_v40 = vadd.f32 %v1597_v9, %v1596_v25  ;;  %v1182_v46 = vmul.f32 %v908_v28, %v2686_v33  ;;  %v1246_v42 = vmul.f32 %v1068_v29, %v2686_v33  ;;  %v2834_v49 = vpop.f32.mrb[36].mxu0  ;;  %v2836_v20 = vpop.f32.mrb[36].mxu1 }
 0x214   : > { %v1368_v39 = vrot.slane %v1367_v21, 1  ;;  %v1592_v23 = vrot.slane %v1591_v62, 1  ;;  %v1377_v4 = vadd.f32 %v1181_v22, %v1179_v44  ;;  %v1601_v41 = vadd.f32 %v1245_v27, %v1243_v55  ;;  %v2838_v63 = vpop.f32.mrb[37].mxu0  ;;  %v2840_v5 = vpop.f32.mrb[37].mxu1 }
 0x215   : > { %v1375_v16 = vrot.slane %v1374_v45, 1  ;;  %v1599_v15 = vrot.slane %v1598_v40, 1  ;;  %v1384_v17 = vadd.f32 %v1182_v46, %v1180_v47  ;;  %v1608_v35 = vadd.f32 %v1246_v42, %v1244_v59  ;;  %v2842_v51 = vpop.f32.mrb[38].mxu0  ;;  %v2844_v28 = vpop.f32.mrb[38].mxu1 }
 0x216   : > { %v1369_v29 = vadd.f32 %v1368_v39, %v1367_v21  ;;  %v1593_v24 = vadd.f32 %v1592_v23, %v1591_v62  ;;  %v1378_v53 = vrot.slane %v1377_v4, 4  ;;  %v1602_v54 = vrot.slane %v1601_v41, 4  ;;  %v2846_v10 = vpop.f32.mrb[39].mxu0  ;;  %v2848_v56 = vpop.f32.mrb[39].mxu1 }
 0x217   : > { %v1376_v57 = vadd.f32 %v1375_v16, %v1374_v45  ;;  %v1600_v18 = vadd.f32 %v1599_v15, %v1598_v40  ;;  %v1385_v25 = vrot.slane %v1384_v17, 4  ;;  %v1609_v36 = vrot.slane %v1608_v35, 4 }
 0x218   : > { %v1822_v37 = vsel %vm1821_vm7, %v1369_v29, %v1820_v26  ;;  %v1851_v44 = vsel %vm1821_vm7, %v1593_v24, %v1850_v12  ;;  %v1379_v55 = vadd.f32 %v1378_v53, %v1377_v4  ;;  %v1603_v58 = vadd.f32 %v1602_v54, %v1601_v41 }
 0x219   : > { %v1830_v9 = vsel %vm1821_vm7, %v1376_v57, %v1829_v1  ;;  %v1858_v47 = vsel %vm1821_vm7, %v1600_v18, %v1857_v11  ;;  %v1386_v59 = vadd.f32 %v1385_v25, %v1384_v17  ;;  %v1610_v21 = vadd.f32 %v1609_v36, %v1608_v35 }
 0x21a   : > { %v1380_v62 = vrot.slane %v1379_v55, 2  ;;  %v1604_v22 = vrot.slane %v1603_v58, 2  ;;  %v1183_v27 = vmul.f32 %v2800_v34, %v2680_v48  ;;  %v1247_v45 = vmul.f32 %v2802_v50, %v2680_v48 }
 0x21b   : > { %v1387_v40 = vrot.slane %v1386_v59, 2  ;;  %v1611_v26 = vrot.slane %v1610_v21, 2  ;;  %v1184_v12 = vmul.f32 %v2804_v52, %v2684_v32  ;;  %v1248_v1 = vmul.f32 %v2806_v31, %v2684_v32  ;;  %v2862_v46 = vpop.f32.mrb[40].mxu0  ;;  %v2864_v11 = vpop.f32.mrb[40].mxu1 }
 0x21c   : > { %v1381_v42 = vadd.f32 %v1380_v62, %v1379_v55  ;;  %v1605_v39 = vadd.f32 %v1604_v22, %v1603_v58  ;;  %v1185_v34 = vmul.f32 %v2808_v19, %v2682_v38  ;;  %v1249_v50 = vmul.f32 %v2810_v3, %v2682_v38  ;;  %v2870_v23 = vpop.f32.mrb[41].mxu0  ;;  %v2872_v4 = vpop.f32.mrb[41].mxu1 }
 0x21d   : > { %v1388_v52 = vadd.f32 %v1387_v40, %v1386_v59  ;;  %v1612_v41 = vadd.f32 %v1611_v26, %v1610_v21  ;;  %v1186_v31 = vmul.f32 %v2814_v6, %v2686_v33  ;;  %v1250_v16 = vmul.f32 %v2816_v30, %v2686_v33  ;;  %v2878_v15 = vpop.f32.mrb[42].mxu0  ;;  %v2880_v17 = vpop.f32.mrb[42].mxu1 }
 0x21e   : > { %v1382_v19 = vrot.slane %v1381_v42, 1  ;;  %v1606_v35 = vrot.slane %v1605_v39, 1  ;;  %v1391_v29 = vadd.f32 %v1185_v34, %v1183_v27  ;;  %v1615_v3 = vadd.f32 %v1249_v50, %v1247_v45  ;;  %v2882_v24 = vpop.f32.mrb[43].mxu0  ;;  %v2884_v53 = vpop.f32.mrb[43].mxu1 }
 0x21f   : > { %v1389_v54 = vrot.slane %v1388_v52, 1  ;;  %v1613_v57 = vrot.slane %v1612_v41, 1  ;;  %v1398_v18 = vadd.f32 %v1186_v31, %v1184_v12  ;;  %v1622_v25 = vadd.f32 %v1250_v16, %v1248_v1 }
 0x220   : > { %v1383_v6 = vadd.f32 %v1382_v19, %v1381_v42  ;;  %v1607_v36 = vadd.f32 %v1606_v35, %v1605_v39  ;;  %v1392_v55 = vrot.slane %v1391_v29, 4  ;;  %v1616_v30 = vrot.slane %v1615_v3, 4 }
 0x221   : > { %v1390_v58 = vadd.f32 %v1389_v54, %v1388_v52  ;;  %v1614_v59 = vadd.f32 %v1613_v57, %v1612_v41  ;;  %v1399_v21 = vrot.slane %v1398_v18, 4  ;;  %v1623_v62 = vrot.slane %v1622_v25, 4 }
 0x222   : > { %v1824_v22 = vsel %vm1823_vm8, %v1383_v6, %v1822_v37  ;;  %v1852_v27 = vsel %vm1823_vm8, %v1607_v36, %v1851_v44  ;;  %v1393_v45 = vadd.f32 %v1392_v55, %v1391_v29  ;;  %v1617_v40 = vadd.f32 %v1616_v30, %v1615_v3 }
 0x223   : > { %v1882_v26 = vmax.f32 %v1739_v7, %v1824_v22  ;;  %v1886_v12 = vmax.f32 %v1743_v8, %v1852_v27  ;;  %v1831_v1 = vsel %vm1823_vm8, %v1390_v58, %v1830_v9  ;;  %v1859_v37 = vsel %vm1823_vm8, %v1614_v59, %v1858_v47  ;;  %v2898_v42 = vpop.f32.mrb[44].mxu0  ;;  %v2900_v44 = vpop.f32.mrb[44].mxu1 }
 0x224   : > { %v1883_v60 = vmax.f32 %v1740_v13, %v1831_v1  ;;  %v1887_v61 = vmax.f32 %v1744_v14, %v1859_v37  ;;  %v1394_v7 = vrot.slane %v1393_v45, 2  ;;  %v1618_v8 = vrot.slane %v1617_v40, 2  ;;  %v2910_v9 = vpop.f32.mrb[45].mxu0  ;;  %v2912_v47 = vpop.f32.mrb[45].mxu1 }
 0x225   : > { %1890 = vst [vmem:[%s2542_s13] sm:$0xff] %v1882_v26  ;;  %1894 = vst [vmem:[%s2542_s13 + $0x20] sm:$0xff] %v1886_v12  ;;  %v1400_v39 = vadd.f32 %v1399_v21, %v1398_v18  ;;  %v1624_v34 = vadd.f32 %v1623_v62, %v1622_v25  ;;  %v1187_v0 = vmul.f32 %v2834_v49, %v2680_v48  ;;  %v2920_v50 = vpop.f32.mrb[46].mxu0  ;;  %v2922_v2 = vpop.f32.mrb[46].mxu1 }
 0x226   : > { %v1251_v13 = vmul.f32 %v2836_v20, %v2680_v48  ;;  %1891 = vst [vmem:[%s2542_s13 + $0x8] sm:$0xff] %v1883_v60  ;;  %1895 = vst [vmem:[%s2542_s13 + $0x28] sm:$0xff] %v1887_v61  ;;  %v1395_v14 = vadd.f32 %v1394_v7, %v1393_v45  ;;  %v1619_v52 = vadd.f32 %v1618_v8, %v1617_v40  ;;  %v2930_v16 = vpop.f32.mrb[47].mxu0  ;;  %v2932_v49 = vpop.f32.mrb[47].mxu1 }
 0x227   : > { %v1188_v41 = vmul.f32 %v2838_v63, %v2684_v32  ;;  %v1252_v31 = vmul.f32 %v2840_v5, %v2684_v32  ;;  %v1401_v19 = vrot.slane %v1400_v39, 2  ;;  %v1625_v20 = vrot.slane %v1624_v34, 2 }
 0x228   : > { %v1189_v35 = vmul.f32 %v2842_v51, %v2682_v38  ;;  %v1253_v29 = vmul.f32 %v2844_v28, %v2682_v38  ;;  %v1396_v3 = vrot.slane %v1395_v14, 1  ;;  %v1620_v54 = vrot.slane %v1619_v52, 1 }
 0x229   : > { %v1190_v63 = vmul.f32 %v2846_v10, %v2686_v33  ;;  %v1254_v5 = vmul.f32 %v2848_v56, %v2686_v33  ;;  %v1402_v57 = vadd.f32 %v1401_v19, %v1400_v39  ;;  %v1626_v18 = vadd.f32 %v1625_v20, %v1624_v34 }
 0x22a   : > { %v1405_v25 = vadd.f32 %v1189_v35, %v1187_v0  ;;  %v1629_v6 = vadd.f32 %v1253_v29, %v1251_v13  ;;  %v2942_v36 = vadd.f32 %v1396_v3, %v1395_v14  ;;  %v2944_v55 = vadd.f32 %v1620_v54, %v1619_v52 }
 0x22b   : > { %v1412_v51 = vadd.f32 %v1190_v63, %v1188_v41  ;;  %v1636_v30 = vadd.f32 %v1254_v5, %v1252_v31  ;;  %v1403_v58 = vrot.slane %v1402_v57, 1  ;;  %v1627_v28 = vrot.slane %v1626_v18, 1  ;;  %v2946_v62 = vpop.f32.mrb[48].mxu0  ;;  %v2948_v10 = vpop.f32.mrb[48].mxu1 }
 0x22c   : > { %v1406_v59 = vrot.slane %v1405_v25, 4  ;;  %v1630_v21 = vrot.slane %v1629_v6, 4  ;;  %v1191_v27 = vmul.f32 %v2862_v46, %v2680_v48  ;;  %v1255_v45 = vmul.f32 %v2864_v11, %v2680_v48  ;;  %v2954_v40 = vpop.f32.mrb[49].mxu0  ;;  %v2956_v26 = vpop.f32.mrb[49].mxu1 }
 0x22d   : > { %v1413_v22 = vrot.slane %v1412_v51, 4  ;;  %v1637_v56 = vrot.slane %v1636_v30, 4  ;;  %v1404_v12 = vadd.f32 %v1403_v58, %v1402_v57  ;;  %v1628_v1 = vadd.f32 %v1627_v28, %v1626_v18  ;;  %v2958_v61 = vpop.f32.mrb[50].mxu0  ;;  %v2960_v7 = vpop.f32.mrb[50].mxu1 }
 0x22e   : > { %v1407_v37 = vadd.f32 %v1406_v59, %v1405_v25  ;;  %v1631_v60 = vadd.f32 %v1630_v21, %v1629_v6  ;;  %v1192_v46 = vmul.f32 %v2870_v23, %v2684_v32  ;;  %v1256_v11 = vmul.f32 %v2872_v4, %v2684_v32  ;;  %v2966_v34 = vpop.f32.mrb[51].mxu0  ;;  %v2968_v0 = vpop.f32.mrb[51].mxu1 }
 0x22f   : > { %v1414_v8 = vadd.f32 %v1413_v22, %v1412_v51  ;;  %v1638_v39 = vadd.f32 %v1637_v56, %v1636_v30  ;;  %v1193_v52 = vmul.f32 %v2878_v15, %v2682_v38  ;;  %v1257_v41 = vmul.f32 %v2880_v17, %v2682_v38 }
 0x230   : > { %v1408_v13 = vrot.slane %v1407_v37, 2  ;;  %v1632_v14 = vrot.slane %v1631_v60, 2  ;;  %v1194_v23 = vmul.f32 %v2882_v24, %v2686_v33  ;;  %v1258_v4 = vmul.f32 %v2884_v53, %v2686_v33 }
 0x231   : > { %v1415_v31 = vrot.slane %v1414_v8, 2  ;;  %v1639_v19 = vrot.slane %v1638_v39, 2  ;;  %v1419_v29 = vadd.f32 %v1193_v52, %v1191_v27  ;;  %v1643_v3 = vadd.f32 %v1257_v41, %v1255_v45 }
 0x232   : > { %v1409_v20 = vadd.f32 %v1408_v13, %v1407_v37  ;;  %v1633_v35 = vadd.f32 %v1632_v14, %v1631_v60  ;;  %v1426_v5 = vadd.f32 %v1194_v23, %v1192_v46  ;;  %v1650_v57 = vadd.f32 %v1258_v4, %v1256_v11 }
 0x233   : > { %v1416_v54 = vadd.f32 %v1415_v31, %v1414_v8  ;;  %v1640_v63 = vadd.f32 %v1639_v19, %v1638_v39  ;;  %v1420_v25 = vrot.slane %v1419_v29, 4  ;;  %v1644_v17 = vrot.slane %v1643_v3, 4  ;;  %v2978_v6 = vpop.f32.mrb[52].mxu0  ;;  %v2980_v51 = vpop.f32.mrb[52].mxu1 }
 0x234   : > { %v1410_v15 = vrot.slane %v1409_v20, 1  ;;  %v1634_v18 = vrot.slane %v1633_v35, 1  ;;  %v1427_v58 = vrot.slane %v1426_v5, 4  ;;  %v1651_v53 = vrot.slane %v1650_v57, 4  ;;  %v2982_v28 = vpop.f32.mrb[53].mxu0  ;;  %v2984_v59 = vpop.f32.mrb[53].mxu1 }
 0x235   : > { %v1417_v24 = vrot.slane %v1416_v54, 1  ;;  %v1641_v30 = vrot.slane %v1640_v63, 1  ;;  %v1421_v56 = vadd.f32 %v1420_v25, %v1419_v29  ;;  %v1645_v27 = vadd.f32 %v1644_v17, %v1643_v3  ;;  %v2986_v45 = vpop.f32.mrb[54].mxu0  ;;  %v2988_v37 = vpop.f32.mrb[54].mxu1 }
 0x236   : > { %v1411_v21 = vadd.f32 %v1410_v15, %v1409_v20  ;;  %v1635_v22 = vadd.f32 %v1634_v18, %v1633_v35  ;;  %v1428_v39 = vadd.f32 %v1427_v58, %v1426_v5  ;;  %v1652_v46 = vadd.f32 %v1651_v53, %v1650_v57  ;;  %v2990_v11 = vpop.f32.mrb[55].mxu0  ;;  %v2992_v13 = vpop.f32.mrb[55].mxu1 }
 0x237   : > { %v1418_v60 = vadd.f32 %v1417_v24, %v1416_v54  ;;  %v1642_v8 = vadd.f32 %v1641_v30, %v1640_v63  ;;  %v1422_v41 = vrot.slane %v1421_v56, 2  ;;  %v1646_v31 = vrot.slane %v1645_v27, 2 }
 0x238   : > { %v1832_v14 = vsel %vm1811_vm2, %v1411_v21, %v2942_v36  ;;  %v1860_v52 = vsel %vm1811_vm2, %v1635_v22, %v2944_v55  ;;  %v1429_v4 = vrot.slane %v1428_v39, 2  ;;  %v1653_v20 = vrot.slane %v1652_v46, 2 }
 0x239   : > { %v1839_v19 = vsel %vm1811_vm2, %v1418_v60, %v1404_v12  ;;  %v1867_v23 = vsel %vm1811_vm2, %v1642_v8, %v1628_v1  ;;  %v1423_v35 = vadd.f32 %v1422_v41, %v1421_v56  ;;  %v1647_v29 = vadd.f32 %v1646_v31, %v1645_v27 }
 0x23a   : > { %v1195_v3 = vmul.f32 %v2898_v42, %v2680_v48  ;;  %v1259_v54 = vmul.f32 %v2900_v44, %v2680_v48  ;;  %v1430_v36 = vadd.f32 %v1429_v4, %v1428_v39  ;;  %v1654_v63 = vadd.f32 %v1653_v20, %v1652_v46 }
 0x23b   : > { %v1196_v55 = vmul.f32 %v2910_v9, %v2684_v32  ;;  %v1260_v12 = vmul.f32 %v2912_v47, %v2684_v32  ;;  %v1424_v5 = vrot.slane %v1423_v35, 1  ;;  %v1648_v1 = vrot.slane %v1647_v29, 1  ;;  %v3012_v42 = vpop.f32.mrb[56].mxu0  ;;  %v3014_v18 = vpop.f32.mrb[56].mxu1 }
 0x23c   : > { %v1197_v57 = vmul.f32 %v2920_v50, %v2682_v38  ;;  %v1261_v15 = vmul.f32 %v2922_v2, %v2682_v38  ;;  %v1431_v44 = vrot.slane %v1430_v36, 1  ;;  %v1655_v25 = vrot.slane %v1654_v63, 1  ;;  %v3020_v17 = vpop.f32.mrb[57].mxu0  ;;  %v3022_v24 = vpop.f32.mrb[57].mxu1 }
 0x23d   : > { %v1198_v9 = vmul.f32 %v2930_v16, %v2686_v33  ;;  %v1262_v47 = vmul.f32 %v2932_v49, %v2686_v33  ;;  %v1425_v50 = vadd.f32 %v1424_v5, %v1423_v35  ;;  %v1649_v30 = vadd.f32 %v1648_v1, %v1647_v29  ;;  %v3024_v53 = vpop.f32.mrb[58].mxu0  ;;  %v3026_v21 = vpop.f32.mrb[58].mxu1 }
 0x23e   : > { %v1433_v58 = vadd.f32 %v1197_v57, %v1195_v3  ;;  %v1657_v2 = vadd.f32 %v1261_v15, %v1259_v54  ;;  %v1432_v22 = vadd.f32 %v1431_v44, %v1430_v36  ;;  %v1656_v56 = vadd.f32 %v1655_v25, %v1654_v63  ;;  %v3028_v16 = vpop.f32.mrb[59].mxu0  ;;  %v3030_v8 = vpop.f32.mrb[59].mxu1 }
 0x23f   : > { %v1440_v27 = vadd.f32 %v1198_v9, %v1196_v55  ;;  %v1664_v60 = vadd.f32 %v1262_v47, %v1260_v12  ;;  %v1833_v49 = vsel %vm1813_vm3, %v1425_v50, %v1832_v14  ;;  %v1861_v39 = vsel %vm1813_vm3, %v1649_v30, %v1860_v52 }
 0x240   : > { %v1434_v46 = vrot.slane %v1433_v58, 4  ;;  %v1658_v41 = vrot.slane %v1657_v2, 4  ;;  %v1840_v31 = vsel %vm1813_vm3, %v1432_v22, %v1839_v19  ;;  %v1868_v4 = vsel %vm1813_vm3, %v1656_v56, %v1867_v23 }
 0x241   : > { %v1441_v20 = vrot.slane %v1440_v27, 4  ;;  %v1665_v35 = vrot.slane %v1664_v60, 4  ;;  %v1199_v54 = vmul.f32 %v2946_v62, %v2680_v48  ;;  %v1263_v36 = vmul.f32 %v2948_v10, %v2680_v48 }
 0x242   : > { %v1435_v29 = vadd.f32 %v1434_v46, %v1433_v58  ;;  %v1659_v3 = vadd.f32 %v1658_v41, %v1657_v2  ;;  %v1200_v52 = vmul.f32 %v2954_v40, %v2684_v32  ;;  %v1264_v19 = vmul.f32 %v2956_v26, %v2684_v32 }
 0x243   : > { %v1442_v63 = vadd.f32 %v1441_v20, %v1440_v27  ;;  %v1666_v14 = vadd.f32 %v1665_v35, %v1664_v60  ;;  %v1201_v12 = vmul.f32 %v2958_v61, %v2682_v38  ;;  %v1265_v5 = vmul.f32 %v2960_v7, %v2682_v38  ;;  %v3048_v62 = vpop.f32.mrb[60].mxu0  ;;  %v3050_v1 = vpop.f32.mrb[60].mxu1 }
 0x244   : > { %v1436_v55 = vrot.slane %v1435_v29, 2  ;;  %v1660_v23 = vrot.slane %v1659_v3, 2  ;;  %v1202_v40 = vmul.f32 %v2966_v34, %v2686_v33  ;;  %v1266_v26 = vmul.f32 %v2968_v0, %v2686_v33  ;;  %v3056_v15 = vpop.f32.mrb[61].mxu0  ;;  %v3058_v44 = vpop.f32.mrb[61].mxu1 }
 0x245   : > { %v1443_v10 = vrot.slane %v1442_v63, 2  ;;  %v1667_v57 = vrot.slane %v1666_v14, 2  ;;  %v1447_v9 = vadd.f32 %v1201_v12, %v1199_v54  ;;  %v1671_v7 = vadd.f32 %v1265_v5, %v1263_v36  ;;  %v3060_v47 = vpop.f32.mrb[62].mxu0  ;;  %v3062_v50 = vpop.f32.mrb[62].mxu1 }
 0x246   : > { %v1437_v61 = vadd.f32 %v1436_v55, %v1435_v29  ;;  %v1661_v25 = vadd.f32 %v1660_v23, %v1659_v3  ;;  %v1454_v2 = vadd.f32 %v1202_v40, %v1200_v52  ;;  %v1678_v22 = vadd.f32 %v1266_v26, %v1264_v19  ;;  %v3064_v34 = vpop.f32.mrb[63].mxu0  ;;  %v3066_v56 = vpop.f32.mrb[63].mxu1 }
 0x247   : > { %v1444_v30 = vadd.f32 %v1443_v10, %v1442_v63  ;;  %v1668_v58 = vadd.f32 %v1667_v57, %v1666_v14  ;;  %v1448_v60 = vrot.slane %v1447_v9, 4  ;;  %v1672_v46 = vrot.slane %v1671_v7, 4 }
 0x248   : > { %v1438_v0 = vrot.slane %v1437_v61, 1  ;;  %v1662_v27 = vrot.slane %v1661_v25, 1  ;;  %v1455_v35 = vrot.slane %v1454_v2, 4  ;;  %v1679_v29 = vrot.slane %v1678_v22, 4 }
 0x249   : > { %v1445_v41 = vrot.slane %v1444_v30, 1  ;;  %v1669_v20 = vrot.slane %v1668_v58, 1  ;;  %v1449_v36 = vadd.f32 %v1448_v60, %v1447_v9  ;;  %v1673_v55 = vadd.f32 %v1672_v46, %v1671_v7 }
 0x24a   : > { %v1439_v3 = vadd.f32 %v1438_v0, %v1437_v61  ;;  %v1663_v54 = vadd.f32 %v1662_v27, %v1661_v25  ;;  %v1456_v52 = vadd.f32 %v1455_v35, %v1454_v2  ;;  %v1680_v19 = vadd.f32 %v1679_v29, %v1678_v22 }
 0x24b   : > { %v1446_v63 = vadd.f32 %v1445_v41, %v1444_v30  ;;  %v1670_v14 = vadd.f32 %v1669_v20, %v1668_v58  ;;  %v1450_v5 = vrot.slane %v1449_v36, 2  ;;  %v1674_v10 = vrot.slane %v1673_v55, 2 }
 0x24c   : > { %v1834_v23 = vsel %vm1815_vm4, %v1439_v3, %v1833_v49  ;;  %v1862_v12 = vsel %vm1815_vm4, %v1663_v54, %v1861_v39  ;;  %v1457_v26 = vrot.slane %v1456_v52, 2  ;;  %v1681_v43 = vrot.slane %v1680_v19, 2 }
 0x24d   : > { %v1841_v57 = vsel %vm1815_vm4, %v1446_v63, %v1840_v31  ;;  %v1869_v40 = vsel %vm1815_vm4, %v1670_v14, %v1868_v4  ;;  %v1451_v61 = vadd.f32 %v1450_v5, %v1449_v36  ;;  %v1675_v25 = vadd.f32 %v1674_v10, %v1673_v55 }
 0x24e   : > { %v1203_v9 = vmul.f32 %v2978_v6, %v2680_v48  ;;  %v1267_v7 = vmul.f32 %v2980_v51, %v2680_v48  ;;  %v1458_v30 = vadd.f32 %v1457_v26, %v1456_v52  ;;  %v1682_v49 = vadd.f32 %v1681_v43, %v1680_v19 }
 0x24f   : > { %v1204_v39 = vmul.f32 %v2982_v28, %v2684_v32  ;;  %v1268_v31 = vmul.f32 %v2984_v59, %v2684_v32  ;;  %v1452_v58 = vrot.slane %v1451_v61, 1  ;;  %v1676_v4 = vrot.slane %v1675_v25, 1 }
 0x250   : > { %v1205_v2 = vmul.f32 %v2986_v45, %v2682_v38  ;;  %v1269_v22 = vmul.f32 %v2988_v37, %v2682_v38  ;;  %v1459_v6 = vrot.slane %v1458_v30, 1  ;;  %v1683_v0 = vrot.slane %v1682_v49, 1 }
 0x251   : > { %v1206_v51 = vmul.f32 %v2990_v11, %v2686_v33  ;;  %v1270_v43 = vmul.f32 %v2992_v13, %v2686_v33  ;;  %v1453_v28 = vadd.f32 %v1452_v58, %v1451_v61  ;;  %v1677_v27 = vadd.f32 %v1676_v4, %v1675_v25 }
 0x252   : > { %v1461_v60 = vadd.f32 %v1205_v2, %v1203_v9  ;;  %v1685_v59 = vadd.f32 %v1269_v22, %v1267_v7  ;;  %v1460_v46 = vadd.f32 %v1459_v6, %v1458_v30  ;;  %v1684_v41 = vadd.f32 %v1683_v0, %v1682_v49 }
 0x253   : > { %v1468_v20 = vadd.f32 %v1206_v51, %v1204_v39  ;;  %v1692_v35 = vadd.f32 %v1270_v43, %v1268_v31  ;;  %v1835_v45 = vsel %vm1817_vm5, %v1453_v28, %v1834_v23  ;;  %v1863_v37 = vsel %vm1817_vm5, %v1677_v27, %v1862_v12 }
 0x254   : > { %v1462_v29 = vrot.slane %v1461_v60, 4  ;;  %v1686_v3 = vrot.slane %v1685_v59, 4  ;;  %v1842_v54 = vsel %vm1817_vm5, %v1460_v46, %v1841_v57  ;;  %v1870_v11 = vsel %vm1817_vm5, %v1684_v41, %v1869_v40 }
 0x255   : > { %v1469_v36 = vrot.slane %v1468_v20, 4  ;;  %v1693_v13 = vrot.slane %v1692_v35, 4  ;;  %v1207_v14 = vmul.f32 %v3012_v42, %v2680_v48  ;;  %v1271_v52 = vmul.f32 %v3014_v18, %v2680_v48 }
 0x256   : > { %v1463_v55 = vadd.f32 %v1462_v29, %v1461_v60  ;;  %v1687_v63 = vadd.f32 %v1686_v3, %v1685_v59  ;;  %v1208_v12 = vmul.f32 %v3020_v17, %v2684_v32  ;;  %v1272_v5 = vmul.f32 %v3022_v24, %v2684_v32 }
 0x257   : > { %v1470_v19 = vadd.f32 %v1469_v36, %v1468_v20  ;;  %v1694_v23 = vadd.f32 %v1693_v13, %v1692_v35  ;;  %v1209_v40 = vmul.f32 %v3024_v53, %v2682_v38  ;;  %v1273_v26 = vmul.f32 %v3026_v21, %v2682_v38 }
 0x258   : > { %v1464_v10 = vrot.slane %v1463_v55, 2  ;;  %v1688_v57 = vrot.slane %v1687_v63, 2  ;;  %v1210_v18 = vmul.f32 %v3028_v16, %v2686_v33  ;;  %v1274_v25 = vmul.f32 %v3030_v8, %v2686_v33 }
 0x259   : > { %v1471_v42 = vrot.slane %v1470_v19, 2  ;;  %v1695_v61 = vrot.slane %v1694_v23, 2  ;;  %v1475_v7 = vadd.f32 %v1209_v40, %v1207_v14  ;;  %v1699_v24 = vadd.f32 %v1273_v26, %v1271_v52 }
 0x25a   : > { %v1465_v17 = vadd.f32 %v1464_v10, %v1463_v55  ;;  %v1689_v9 = vadd.f32 %v1688_v57, %v1687_v63  ;;  %v1482_v39 = vadd.f32 %v1210_v18, %v1208_v12  ;;  %v1706_v31 = vadd.f32 %v1274_v25, %v1272_v5 }
 0x25b   : > { %v1472_v30 = vadd.f32 %v1471_v42, %v1470_v19  ;;  %v1696_v49 = vadd.f32 %v1695_v61, %v1694_v23  ;;  %v1476_v4 = vrot.slane %v1475_v7, 4  ;;  %v1700_v21 = vrot.slane %v1699_v24, 4 }
 0x25c   : > { %v1466_v53 = vrot.slane %v1465_v17, 1  ;;  %v1690_v58 = vrot.slane %v1689_v9, 1  ;;  %v1483_v6 = vrot.slane %v1482_v39, 4  ;;  %v1707_v0 = vrot.slane %v1706_v31, 4 }
 0x25d   : > { %v1473_v2 = vrot.slane %v1472_v30, 1  ;;  %v1697_v22 = vrot.slane %v1696_v49, 1  ;;  %v1477_v43 = vadd.f32 %v1476_v4, %v1475_v7  ;;  %v1701_v8 = vadd.f32 %v1700_v21, %v1699_v24 }
 0x25e   : > { %v1467_v16 = vadd.f32 %v1466_v53, %v1465_v17  ;;  %v1691_v51 = vadd.f32 %v1690_v58, %v1689_v9  ;;  %v1484_v60 = vadd.f32 %v1483_v6, %v1482_v39  ;;  %v1708_v59 = vadd.f32 %v1707_v0, %v1706_v31  ;;  %v1730_v58 = vld [vmem:[%s2542_s13 + $0x10] sm:$0xff] }
 0x25f   : > { %v1474_v28 = vadd.f32 %v1473_v2, %v1472_v30  ;;  %v1698_v27 = vadd.f32 %v1697_v22, %v1696_v49  ;;  %v1478_v20 = vrot.slane %v1477_v43, 2  ;;  %v1702_v35 = vrot.slane %v1701_v8, 2  ;;  %v1734_v22 = vld [vmem:[%s2542_s13 + $0x30] sm:$0xff] }
 0x260   : > { %v1836_v46 = vsel %vm1819_vm6, %v1467_v16, %v1835_v45  ;;  %v1864_v41 = vsel %vm1819_vm6, %v1691_v51, %v1863_v37  ;;  %v1485_v36 = vrot.slane %v1484_v60, 2  ;;  %v1709_v13 = vrot.slane %v1708_v59, 2 }
 0x261   : > { %v1843_v29 = vsel %vm1819_vm6, %v1474_v28, %v1842_v54  ;;  %v1871_v3 = vsel %vm1819_vm6, %v1698_v27, %v1870_v11  ;;  %v1479_v55 = vadd.f32 %v1478_v20, %v1477_v43  ;;  %v1703_v63 = vadd.f32 %v1702_v35, %v1701_v8  ;;  %v1735_v20 = vld [vmem:[%s2542_s13 + $0x38] sm:$0xff] }
 0x262   : > { %v1486_v14 = vadd.f32 %v1485_v36, %v1484_v60  ;;  %v1710_v52 = vadd.f32 %v1709_v13, %v1708_v59  ;;  %v1211_v19 = vmul.f32 %v3048_v62, %v2680_v48  ;;  %v1275_v45 = vmul.f32 %v3050_v1, %v2680_v48 }
 0x263   : > { %v1480_v23 = vrot.slane %v1479_v55, 1  ;;  %v1704_v12 = vrot.slane %v1703_v63, 1  ;;  %v1213_v37 = vmul.f32 %v3060_v47, %v2682_v38  ;;  %v1212_v11 = vmul.f32 %v3056_v15, %v2684_v32 }
 0x264   : > { %v1487_v54 = vrot.slane %v1486_v14, 1  ;;  %v1711_v5 = vrot.slane %v1710_v52, 1  ;;  %v1277_v10 = vmul.f32 %v3062_v50, %v2682_v38  ;;  %v1214_v62 = vmul.f32 %v3064_v34, %v2686_v33 }
 0x265   : > { %v1481_v57 = vadd.f32 %v1480_v23, %v1479_v55  ;;  %v1705_v40 = vadd.f32 %v1704_v12, %v1703_v63  ;;  %v1489_v26 = vadd.f32 %v1213_v37, %v1211_v19  ;;  %v1276_v48 = vmul.f32 %v3058_v44, %v2684_v32 }
 0x266   : > { %v1488_v42 = vadd.f32 %v1487_v54, %v1486_v14  ;;  %v1712_v61 = vadd.f32 %v1711_v5, %v1710_v52  ;;  %v1713_v1 = vadd.f32 %v1277_v10, %v1275_v45  ;;  %v1496_v25 = vadd.f32 %v1214_v62, %v1212_v11 }
 0x267   : > { %v1837_v47 = vsel %vm1821_vm7, %v1481_v57, %v1836_v46  ;;  %v1865_v18 = vsel %vm1821_vm7, %v1705_v40, %v1864_v41  ;;  %v1490_v15 = vrot.slane %v1489_v26, 4  ;;  %v1278_v34 = vmul.f32 %v3066_v56, %v2686_v33  ;;  %v1731_v33 = vld [vmem:[%s2542_s13 + $0x18] sm:$0xff] }
 0x268   : > { %v1844_v38 = vsel %vm1821_vm7, %v1488_v42, %v1843_v29  ;;  %v1872_v50 = vsel %vm1821_vm7, %v1712_v61, %v1871_v3  ;;  %v1714_v17 = vrot.slane %v1713_v1, 4  ;;  %v1497_v7 = vrot.slane %v1496_v25, 4 }
 0x269   : > { %v1491_v9 = vadd.f32 %v1490_v15, %v1489_v26  ;;  %v1720_v44 = vadd.f32 %v1278_v34, %v1276_v48  ;;  %v1741_v43 = vsel %vm2688_vm1, -inf, %v1730_v58  ;;  %v1745_v27 = vsel %vm2688_vm1, -inf, %v1734_v22 }
 0x26a   : > { %v1715_v32 = vadd.f32 %v1714_v17, %v1713_v1  ;;  %v1498_v30 = vadd.f32 %v1497_v7, %v1496_v25  ;;  %v1742_v41 = vsel %vm2688_vm1, -inf, %v1731_v33  ;;  %v1746_v14 = vsel %vm2688_vm1, -inf, %v1735_v20 }
 0x26b   : > { %v1492_v24 = vrot.slane %v1491_v9, 2  ;;  %v1721_v39 = vrot.slane %v1720_v44, 4 }
 0x26c   : > { %v1716_v49 = vrot.slane %v1715_v32, 2  ;;  %v1499_v53 = vrot.slane %v1498_v30, 2 }
 0x26d   : > { %v1493_v31 = vadd.f32 %v1492_v24, %v1491_v9  ;;  %v1722_v21 = vadd.f32 %v1721_v39, %v1720_v44 }
 0x26e   : > { %v1717_v4 = vadd.f32 %v1716_v49, %v1715_v32  ;;  %v1500_v6 = vadd.f32 %v1499_v53, %v1498_v30 }
 0x26f   : > { %v1494_v2 = vrot.slane %v1493_v31, 1  ;;  %v1723_v56 = vrot.slane %v1722_v21, 2 }
 0x270   : > { %v1718_v0 = vrot.slane %v1717_v4, 1  ;;  %v1501_v8 = vrot.slane %v1500_v6, 1 }
 0x271   : > { %v1495_v16 = vadd.f32 %v1494_v2, %v1493_v31  ;;  %v1724_v60 = vadd.f32 %v1723_v56, %v1722_v21 }
 0x272   : > { %v1719_v28 = vadd.f32 %v1718_v0, %v1717_v4  ;;  %v1502_v46 = vadd.f32 %v1501_v8, %v1500_v6 }
 0x273   : > { %v1838_v59 = vsel %vm1823_vm8, %v1495_v16, %v1837_v47  ;;  %v1725_v3 = vrot.slane %v1724_v60, 1 }
 0x274   : > { %v1884_v35 = vmax.f32 %v1741_v43, %v1838_v59  ;;  %v1866_v29 = vsel %vm1823_vm8, %v1719_v28, %v1865_v18  ;;  %v1845_v13 = vsel %vm1823_vm8, %v1502_v46, %v1844_v38 }
 0x275   : > { %v1888_v36 = vmax.f32 %v1745_v27, %v1866_v29  ;;  %v1885_v55 = vmax.f32 %v1742_v41, %v1845_v13  ;;  %v1726_v63 = vadd.f32 %v1725_v3, %v1724_v60 }
 0x276   : > { %1892 = vst [vmem:[%s2542_s13 + $0x10] sm:$0xff] %v1884_v35 }
 0x277   : > { %1896 = vst [vmem:[%s2542_s13 + $0x30] sm:$0xff] %v1888_v36  ;;  %1893 = vst [vmem:[%s2542_s13 + $0x18] sm:$0xff] %v1885_v55  ;;  %v1873_v52 = vsel %vm1823_vm8, %v1726_v63, %v1872_v50 }
 0x278   : > { %v1889_v19 = vmax.f32 %v1746_v14, %v1873_v52 }
 0x27a   : > { %1897 = vst [vmem:[%s2542_s13 + $0x38] sm:$0xff] %v1889_v19 }
 0x27b PF: > { %s2107_s29 = scalar_select %p2488_p2, [#allocation3], [#allocation7] }
 0x27c   : > { %s3293_s6 = smov (!%p2488_p2, %s2361_s6), 0  ;;  %s1922_s15 = sshll.u32 %s2542_s13, 4  ;;  %s3162_s15 = int_to_ptr.vmem [resolvable:$true] %s1922_s15 }
 0x27d   : > { %s1906_s25 = sld [smem:[%s2107_s29 + %s3293_s6]]  ;;  %s3252_s16 = sand.u32 1, %s2345_s27  }
 0x27e   : > { %s2109_s0 = scalar_select %p2488_p2, [#allocation4], [#allocation8] }
 0x27f   : > { %s2265_s19 = scalar_lea.vmem %s3162_s15, 1024 }
 0x280   : > { %s1912_s14 = sld [smem:[%s2109_s0 + %s3293_s6]]  ;;  %s3171_s6 = scalar_lea.sflag [#allocation6], %s3252_s16 }
 0x281   : > { %p2266_p12 = scmp.ne.s32.totalorder %s3162_s15, %s2265_s19 }
 0x283   : > { %s2098_s11 = sadd.s32 4294967295, %s1906_s25  ;;  %p2267_p3 = pnand %p2266_p12, %p2488_p2 }
 0x284   : > { %p1908_p13 = scmp.gt.s32.totalorder %s2098_s11, 0 }
 0x285   : > { %p2268_p4 = pneg %p2267_p3 }
 0x286   : > { %s3295_s11 = smov (!%p1908_p13, %s2098_s11), 0 }
 0x287   : > { %p1910_p0 = scmp.lt.s32.totalorder %s2357_s30, %s3295_s11 }
 0x289   : > { %s3297_s30 = smov (!%p1910_p0, %s2357_s30), %s3295_s11 }
 0x28a   : > { %s1913_s21 = sadd.s32 %s1912_s14, %s3297_s30  ;;  %s2384_s30 = smov [#allocation5]  }
 0x28b   : > { %p1914_p1 = scmp.lt.s32.totalorder %s1913_s21, 3  ;;  %s2269_s13 = sshll.u32 %s2384_s30, 4  ;;  %s2270_s13 = int_to_ptr.vmem [resolvable:$false] %s2269_s13 }
 0x28c   : > { %s2271_s22 = scalar_lea.vmem %s2270_s13, 2048  ;;  %p2272_p6 = scmp.lt.s32.totalorder %s3162_s15, %s2270_s13 }
 0x28d   : > { %s3299_s21 = smov (!%p1914_p1, %s1913_s21), 3  ;;  %p2273_p7 = scmp.lt.s32.totalorder %s2271_s22, %s2265_s19 }
 0x28e   : > { %s2104_s24 = sshll.u32 %s3299_s21, 10 }
 0x28f   : > { %s3167_s12 = scalar_lea.hbm %s3233_s5, %s2104_s24  ;;  %p2274_p8 = por %p2273_p7, %p2272_p6 }
 0x291   : > { %p2275_p9 = pnand %p2274_p8, %p2268_p4 }
 0x293   : > { %2278 = shalt.err (!%p2275_p9)
}
 0x294   : > { %s2279_s9 = scalar_lea.hbm %s3167_s12, 1024  ;;  %s2283_s0 = scalar_lea.hbm %s3233_s5, 4096 }
 0x295   : > { %p2280_p10 = scmp.ne.s32.totalorder %s3167_s12, %s2279_s9  ;;  %p2284_p0 = scmp.lt.u32.totalorder %s3167_s12, %s3233_s5 }
 0x296   : > { %p2285_p1 = scmp.lt.u32.totalorder %s2283_s0, %s2279_s9  ;;  %p2287_p3 = scmp.lt.u32.totalorder %s2279_s9, %s3167_s12 }
 0x297   : > { %p2281_p11 = pnand %p2280_p10, %p2488_p2 }
 0x298   : > { %p2286_p12 = por %p2285_p1, %p2284_p0 }
 0x299   : > { %p2282_p13 = pneg %p2281_p11 }
 0x29a   : > { %p2288_p4 = por %p2287_p3, %p2286_p12 }
 0x29c   : > { %p2289_p6 = pnand %p2288_p4, %p2282_p13 }
 0x29e   : > { %2292 = shalt.err (!%p2289_p6)
}
 0x29f   : > { %s2385_s21 = smov 256   ;;  %s2386_s24 = smov 16  }
 0x2a0   : > { %2111 = dma.vmem_to_hbm [thread:$0]  (%p2488_p2), %s3162_s15, 1024, %s3167_s12, %s3171_s6, %s2385_s21, %s2385_s21, %s2386_s24  }
 0x2a1 PF: > { %p2117_p7 = scmp.ge.s32.totalorder %s2377_s10, 2  ;;  %s1937_s23 = sand.u32 1, %s2341_s1  }
 0x2a2   : > { %s1938_s26 = scalar_lea.sflag [#allocation6], %s1937_s23 }
 0x2a3   : > { %p2114_p8 = pnand %p2117_p7, %p2493_p5 }
 0x2a5   : > { %2336 = dma.done.wait (!%p2114_p8), %s1938_s26, 1024  }
 0x2a6   : > { %2338 = vsyncadd (!%p2114_p8), %s1938_s26, 4294966272  ;;  %s28_s10 = sadd.s32 1, %s2377_s10   ;;  %s3253_s6 = sld [smem:[#allocation11_spill]] }
 0x2a7   : > { %p25_p9 = scmp.ge.s32.totalorder %s28_s10, 20   ;;  %s3254_s18 = sld [smem:[#allocation12_spill]] }
 0x2a8   : > { %s3255_s15 = sld [smem:[#allocation14_spill]]  ;;  %s3256_s9 = sld [smem:[#allocation13_spill]] }
 0x2a9   : > { %s3257_s1 = smov %s2345_s27  ;;  %s3258_s27 = smov %s2349_s28 }
 0x2aa   : > { %s3259_s28 = smov %s2516_s17  ;;  %s3260_s29 = smov %s2365_s7 }
 0x2ab   : > { %s3261_s30 = smov %s2369_s8  ;;  %27 = sbr.rel (!%p25_p9) target bundleno = 31 (0x1f), region = 75 }
 0x2ad   : > { %s3262_s7 = smov %s3254_s18 }
 0x2ae   : > { %s3263_s8 = smov %s3255_s15 }
 0x2b2   :  { %1943 = vsyncpa [#allocation6], 1 }
 0x2b3   :  { %1945 = vsyncpa [#allocation6 + $0x1], 1 }

</bundles_post_ra>
